<compile_context>
chip_gen: v7x
topology: tpu7x:2x2x1
jax: 0.10.0
libtpu: 0.0.40
codegen_flags: <defaults>
</compile_context>

<pallas_src>
import math

import jax
import jax.numpy as jnp
from jax.experimental import pallas as pl
from jax.experimental.pallas import tpu as pltpu

_HALF_LOG_2PI = 0.5 * math.log(2.0 * math.pi)


# ---------------------------------------------------------------------------
# Kernel
# ---------------------------------------------------------------------------
def _log_prob_kernel(const_ref, seg_ref, loc_ref, x_ref, out_ref):
    # loc_ref / x_ref : (TB, lane)   lane-repacked samples (`pack` samples per row)
    # seg_ref         : (lane, pack) block-diagonal segmented-sum matrix with the
    #                                per-feature coefficient -0.5*exp(-2*log_std)
    #                                folded into its nonzero entries
    # const_ref       : (1,) SMEM    = sum(-log_stdev) - N*0.5*log(2*pi)
    # out_ref         : (TB, pack)   one log-prob per packed sample
    diff = x_ref[...].astype(jnp.float32) - loc_ref[...].astype(jnp.float32)
    seg = jnp.dot(
        diff * diff,
        seg_ref[...],
        preferred_element_type=jnp.float32,
        precision=jax.lax.Precision.HIGHEST,  # keep f32; default would bf16-round
    )                                                             # (TB, pack)
    out_ref[...] = seg + const_ref[0]


# ---------------------------------------------------------------------------
# Wrappers
# ---------------------------------------------------------------------------
def normal_scale(log_stdev: jax.Array) -> jax.Array:
    """scale = exp(log_stdev). Trivial elementwise op: plain JAX (no kernel launch)."""
    return jnp.exp(log_stdev)


def normal_forward(logits: jax.Array, log_stdev: jax.Array):
    """Mirror of Normal.forward: returns (loc, scale). loc is a passthrough."""
    return logits, normal_scale(log_stdev)


def _log_prob_jax(logits: jax.Array, x: jax.Array, log_std: jax.Array) -> jax.Array:
    """Plain-JAX log_prob (small-batch fallback and b % pack tail)."""
    d = x.astype(jnp.float32) - logits.astype(jnp.float32)
    inv_var = jnp.exp(-2.0 * log_std)
    return (-0.5 * d * d * inv_var - log_std - _HALF_LOG_2PI).sum(-1)


def normal_log_prob(
    logits: jax.Array,
    x: jax.Array,
    log_stdev: jax.Array,
    *,
    block_rows: int = 4096,
    min_kernel_batch: int = 4096,
) -> jax.Array:
    """log_prob(x) of Normal(loc=logits, scale=exp(log_stdev)), summed over last axis.

    logits, x: (B, N) (f32 or bf16); log_stdev: (N,).  Returns (B,) float32.
    """
    b, n = logits.shape
    f32 = jnp.float32
    log_std = log_stdev.astype(f32)

    # Lane repack factor: how many samples fit side-by-side in 128 lanes.
    pack = 128 // n if (n <= 128 and 128 % n == 0) else 1
    lane = pack * n

    # Small-batch fallback: pallas_call fixed cost dominates; fused XLA wins.
    if b < max(min_kernel_batch, pack):
        return _log_prob_jax(logits, x, log_std)

    # Tail (b % pack, <= pack-1 samples) handled in plain JAX; no jnp.pad HBM copy.
    b_main = (b // pack) * pack
    tail_lp = None
    if b_main < b:
        tail_lp = _log_prob_jax(logits[b_main:], x[b_main:], log_std)
        logits = logits[:b_main]
        x = x[:b_main]

    rows = b_main // pack
    loc_p = logits.reshape(rows, lane)   # row-major contiguous reshape: free, no copy
    x_p = x.reshape(rows, lane)

    # ---- pre-folded constants (computed once, outside the kernel) ----
    neg_inv_2var = -0.5 * jnp.exp(-2.0 * log_std)                     # (N,)
    const_sum = (jnp.sum(-log_std) - n * _HALF_LOG_2PI).reshape(1)    # (1,) f32

    # Block-diagonal segmented-sum matrix with the coefficient folded in.
    group = jnp.arange(lane, dtype=jnp.int32) // n
    is_blk = group[:, None] == jnp.arange(pack, dtype=jnp.int32)[None, :]
    seg_mat = jnp.where(is_blk, jnp.tile(neg_inv_2var, pack)[:, None], 0.0).astype(f32)

    # ---- tile selection (kernel is HBM-bandwidth bound) ----
    #  * cap at 8192 rows: 2 inputs x 2 bufs x (8192,128) f32 = 16 MiB double-buffered,
    #    comfortably under v7x's 64 MiB VMEM (v5e/v6e have 128 MiB).
    #  * keep >= 2 grid steps when possible so both v7x TensorCores get work.
    block_rows = (max(8, min(int(block_rows), 8192)) // 8) * 8
    if rows >= 16:
        half = ((-(-rows // 2)) + 7) // 8 * 8      # ceil(rows/2) rounded up to x8
        tb = min(block_rows, half)
    else:
        tb = rows                                   # full-extent block (no x8 needed)
    grid = (pl.cdiv(rows, tb),)                     # partial last block is masked

    out = pl.pallas_call(
        _log_prob_kernel,
        out_shape=jax.ShapeDtypeStruct((rows, pack), f32),
        grid=grid,
        in_specs=[
            pl.BlockSpec(memory_space=pltpu.MemorySpace.SMEM),        # const_sum (1,)
            pl.BlockSpec((lane, pack), lambda i: (0, 0)),             # seg matrix
            pl.BlockSpec((tb, lane), lambda i: (i, 0)),               # loc tile
            pl.BlockSpec((tb, lane), lambda i: (i, 0)),               # x tile
        ],
        out_specs=pl.BlockSpec((tb, pack), lambda i: (i, 0)),
        compiler_params=pltpu.CompilerParams(
            dimension_semantics=("parallel",),
        ),
    )(const_sum, seg_mat, loc_p, x_p)

    main_lp = out.reshape(-1)
    if tail_lp is not None:
        return jnp.concatenate([main_lp, tail_lp])
    return main_lp


# ---------------------------------------------------------------------------
# Main
# ---------------------------------------------------------------------------
if __name__ == "__main__":
    key = jax.random.PRNGKey(0)
    k1, k2, k3, k4, k5 = jax.random.split(key, 5)

    n_output = 32

    # Module initializes log_stdev to zeros; add a small deterministic
    # perturbation so exp() is exercised nontrivially.
    log_stdev = jnp.zeros((n_output,), jnp.float32) + 0.1 * jax.random.normal(
        k3, (n_output,), jnp.float32
    )

    # --- tiny batch: exercises the plain-JAX small-batch fallback ---
    batch_small = 6
    logits_s = jax.random.normal(k1, (batch_small, n_output), jnp.float32)  # loc
    x_s = jax.random.normal(k2, (batch_small, n_output), jnp.float32)
    loc, scale = normal_forward(logits_s, log_stdev)
    lp_small = normal_log_prob(logits_s, x_s, log_stdev)

    # --- larger batch forced through the Pallas kernel (b % pack != 0 tail too) ---
    batch_k = 1030
    logits_k = jax.random.normal(k4, (batch_k, n_output), jnp.float32)
    x_k = jax.random.normal(k5, (batch_k, n_output), jnp.float32)
    lp_kernel = normal_log_prob(logits_k, x_k, log_stdev, min_kernel_batch=1)

    jax.block_until_ready((loc, scale, lp_small, lp_kernel))

    # Pure-JAX reference (matches torch.distributions.Normal.log_prob summed over -1)
    def ref_lp(lg, xx):
        var = jnp.exp(log_stdev) ** 2
        return (-((xx - lg) ** 2) / (2.0 * var) - log_stdev - _HALF_LOG_2PI).sum(-1)

    assert loc.shape == (batch_small, n_output)
    assert scale.shape == (n_output,)
    assert lp_small.shape == (batch_small,)
    assert lp_kernel.shape == (batch_k,)
    assert jnp.allclose(scale, jnp.exp(log_stdev), rtol=1e-6, atol=1e-6)
    assert jnp.allclose(loc, logits_s)
    assert jnp.allclose(lp_small, ref_lp(logits_s, x_s), rtol=1e-5, atol=1e-5)
    assert jnp.allclose(lp_kernel, ref_lp(logits_k, x_k), rtol=1e-5, atol=1e-5)

    # TODO(synk): dist.sample()/rsample() and returning an actual Distribution
    # object are not part of the requested forward hot path and are not ported.

    print("KERNEL_OK")
</pallas_src>

<mosaic_0001>
module attributes {stable_mosaic.version = 11 : i64} {
  func.func @_log_prob_kernel(%arg0: i32, %arg1: memref<1xf32, #tpu.memory_space<smem>>, %arg2: memref<128x4xf32, #tpu.memory_space<vmem>>, %arg3: memref<136x128xf32, #tpu.memory_space<vmem>>, %arg4: memref<136x128xf32, #tpu.memory_space<vmem>>, %arg5: memref<136x4xf32, #tpu.memory_space<vmem>>) attributes {dimension_semantics = [#tpu.dimension_semantics<parallel>], iteration_bounds = array<i64: 2>, scalar_prefetch = 0 : i64, scratch_operands = 0 : i64, tpu.core_type = #tpu.core_type<tc>, window_params = [{transform_indices = @transform_0, window_bounds = array<i64: 1>}, {pipeline_mode = #tpu.pipeline_mode<synchronous>, transform_indices = @transform_1, window_bounds = array<i64: 128, 4>}, {transform_indices = @transform_2, window_bounds = array<i64: 136, 128>}, {transform_indices = @transform_3, window_bounds = array<i64: 136, 128>}, {transform_indices = @transform_4, window_bounds = array<i64: 136, 4>}]} {
    %c0 = arith.constant 0 : index
    %c0_0 = arith.constant 0 : index
    %0 = vector.load %arg4[%c0, %c0_0] : memref<136x128xf32, #tpu.memory_space<vmem>>, vector<136x128xf32>
    %c0_1 = arith.constant 0 : index
    %c0_2 = arith.constant 0 : index
    %1 = vector.load %arg3[%c0_1, %c0_2] : memref<136x128xf32, #tpu.memory_space<vmem>>, vector<136x128xf32>
    %2 = arith.subf %0, %1 : vector<136x128xf32>
    %3 = arith.mulf %2, %2 : vector<136x128xf32>
    %c0_3 = arith.constant 0 : index
    %c0_4 = arith.constant 0 : index
    %4 = vector.load %arg2[%c0_3, %c0_4] : memref<128x4xf32, #tpu.memory_space<vmem>>, vector<128x4xf32>
    %cst = arith.constant dense<0.000000e+00> : vector<136x4xf32>
    %5 = tpu.matmul %3, %4, %cst {dimension_numbers = #tpu.dot_dimension_numbers<[1], [0], [0], [1], [0, 0, 1, 1], [], []>, precision = #tpu.contract_precision<fp32>} : vector<136x128xf32>, vector<128x4xf32>, vector<136x4xf32> -> vector<136x4xf32>
    %c0_5 = arith.constant 0 : index
    %6 = memref.load %arg1[%c0_5] : memref<1xf32, #tpu.memory_space<smem>>
    %7 = vector.broadcast %6 : f32 to vector<136x4xf32>
    %8 = arith.addf %5, %7 : vector<136x4xf32>
    %c0_6 = arith.constant 0 : index
    %c0_7 = arith.constant 0 : index
    %9 = vector.load %arg5[%c0_6, %c0_7] : memref<136x4xf32, #tpu.memory_space<vmem>>, vector<136x4xf32>
    tpu.vector_store %arg5[%c0_6, %c0_7], %8 {strides = array<i32>} : memref<136x4xf32, #tpu.memory_space<vmem>>, vector<136x4xf32>,
    return
  }
  func.func @transform_0(%arg0: i32) -> i32 {
    %c0_i32 = arith.constant 0 : i32
    %c0_i32_0 = arith.constant 0 : i32
    return %c0_i32 : i32
  }
  func.func @transform_1(%arg0: i32) -> (i32, i32) {
    %c0_i32 = arith.constant 0 : i32
    %c0_i32_0 = arith.constant 0 : i32
    %c0_i32_1 = arith.constant 0 : i32
    return %c0_i32, %c0_i32_0 : i32, i32
  }
  func.func @transform_2(%arg0: i32) -> (i32, i32) {
    %c0_i32 = arith.constant 0 : i32
    %c0_i32_0 = arith.constant 0 : i32
    return %arg0, %c0_i32 : i32, i32
  }
  func.func @transform_3(%arg0: i32) -> (i32, i32) {
    %c0_i32 = arith.constant 0 : i32
    %c0_i32_0 = arith.constant 0 : i32
    return %arg0, %c0_i32 : i32, i32
  }
  func.func @transform_4(%arg0: i32) -> (i32, i32) {
    %c0_i32 = arith.constant 0 : i32
    %c0_i32_0 = arith.constant 0 : i32
    return %arg0, %c0_i32 : i32, i32
  }
}

</mosaic_0001>

<bundles_post_ra>
// kernel: tpu_custom_call.1
= control target key start
LH: loop header
LB: loop body
LE: loop exit
PB: predicated region body
PF: predicated region fallthrough
CT: control target
= control target key end

     0   :  { %s4552_s0 = inlined_call_operand.<no memory space> [shape: f32[1], index: 0, kind: input, shape index: {}]   ;;  %s4553_s1 = inlined_call_operand.vmem [shape: f32[128,4], index: 1, kind: input, shape index: {}]   ;;  %s4554_s2 = inlined_call_operand.hbm [shape: f32[257,128], index: 2, kind: input, shape index: {}]   ;;  %s4555_s3 = inlined_call_operand.hbm [shape: f32[257,128], index: 3, kind: input, shape index: {}]   ;;  %s4556_s4 = inlined_call_operand.vmem [shape: f32[257,4], index: 4, kind: output, shape index: {}]  }
   0x1   :  { %9 = sst [smem:[#allocation2]] %s4552_s0 }
   0x2   :  { %10 = vsyncpa [#allocation4], 0 }
   0x3   :  { %12 = vsyncpa [#allocation4 + $0x1], 0 }
   0x4   :  { %13 = vsyncpa [#allocation6], 0 }
   0x5   :  { %15 = vsyncpa [#allocation6 + $0x1], 0  ;;  %s3377_s17 = smov 0   ;;  %s3379_s18 = smov 0  }
   0x6   :  { %s3381_s19 = smov 0   ;;  %s3383_s20 = smov 0  }
   0x7 LB: > { %s3396_s0 = sadd.s32 4294967295, %s3306_s20   ;;  %s3399_s21 = sadd.s32 1, %s3306_s20   ;;  %s3306_s20 = sphi %s3383_s20, %s4643_s20   ;;  %s3302_s19 = sphi %s3381_s19, %s4642_s19   ;;  %s3298_s18 = sphi %s3379_s18, %s4641_s18   ;;  %s3294_s17 = sphi %s3377_s17, %s4640_s17  }
   0x8   : > { %s67_s22 = ssub.s32 %s3306_s20, %s3399_s21  ;;  %s70_s23 = sadd.s32 1, %s3302_s19 }
   0x9   : > { %p68_p0 = scmp.eq.s32.totalorder %s67_s22, 0  ;;  %p77_p1 = scmp.ne.s32.totalorder %s3302_s19, %s3298_s18 }
   0xa   : > { %p78_p2 = scmp.eq.s32.totalorder %s3306_s20, 0  ;;  %p83_p3 = scmp.ne.s32.totalorder %s3298_s18, %s3294_s17 }
   0xb   : > { %s3409_s24 = scalar_select %p68_p0, %s3302_s19, %s70_s23  }
   0xc   : > { %p3411_p4 = por %p78_p2, %p77_p1  ;;  %p84_p5 = scmp.eq.s32.totalorder %s3396_s0, 0 }
   0xd   : > { %p133_p6 = scmp.eq.s32.totalorder %s3396_s0, 1  ;;  %p2030_p9 = scmp.ge.s32.totalorder %s3306_s20, 2 }
   0xe   : > { %p3417_p7 = por %p84_p5, %p83_p3 }
   0xf   : > { %p3421_p8 = por %p133_p6, %p77_p1  ;;  %161 = sbr.rel (%p2030_p9) target bundleno = 92 (0x5c), region = 24 }
  0x11   : > { %s4585_s27 = scalar_select %p3421_p8, 1, 0 }
  0x16   : > { %164 = sbr.rel (!%p3411_p4) target bundleno = 57 (0x39), region = 28  ;;  %s165_s28 = sand.u32 (%p3411_p4), 1, %s3302_s19  }
  0x17   : > { %s170_s29 = smul.u32 (%p3411_p4), 17, %s3306_s20  ;;  %s3433_s8 = scalar_lea.sflag (%p3411_p4), [#allocation4], %s165_s28 }
  0x18   : > { %s3067_s30 = smul.u32 (%p3411_p4), 136, %s165_s28 }
  0x19   : > { %s171_s5 = ssub.s32 (%p3411_p4), 33, %s170_s29 }
  0x1a   : > { %p172_p10 = scmp.lt.s32.totalorder (%p3411_p4), %s171_s5, 17  ;;  %s169_s9 = scalar_lea.vmem (%p3411_p4), [#allocation3], %s3067_s30 }
  0x1d   : > { %s4645_s5 = smov (!%p172_p10, %s171_s5), 17 }
  0x1e   : > { %s3430_s6 = sshll.u32 %s4645_s5, 7 }
  0x1f   : > { %s176_s7 = ssub.s32 2176, %s3430_s6 }
  0x20   : > { %177 = vsyncadd %s3433_s8, %s176_s7  ;;  %p2032_p11 = scmp.ne.s32.totalorder %s3430_s6, 0  ;;  %s2054_s10 = smul.u32 2176, %s3306_s20 }
  0x21   : > { %s182_s11 = sshll.u32 %s169_s9, 4  ;;  %s3184_s22 = scalar_lea.hbm %s4554_s2, 4224  ;;  %s3443_s11 = int_to_ptr.vmem [resolvable:$true] %s182_s11 }
  0x22   : > { %s3441_s14 = scalar_lea.hbm %s4554_s2, %s2054_s10 }
  0x23   : > { %s3180_s15 = scalar_lea.hbm %s3441_s14, %s3430_s6  ;;  %p3185_p1 = scmp.lt.u32.totalorder %s3441_s14, %s4554_s2 }
  0x24   : > { %p3181_p12 = scmp.ne.s32.totalorder %s3441_s14, %s3180_s15  ;;  %p3186_p2 = scmp.lt.u32.totalorder %s3184_s22, %s3180_s15 }
  0x25   : > { %p3188_p5 = scmp.lt.u32.totalorder %s3180_s15, %s3441_s14 }
  0x26   : > { %p3182_p13 = pnand %p3181_p12, %p2032_p11  ;;  %p3187_p3 = por %p3186_p2, %p3185_p1 }
  0x28   : > { %p3183_p0 = pneg %p3182_p13  ;;  %p3189_p6 = por %p3188_p5, %p3187_p3 }
  0x2a   : > { %p3190_p9 = pnand %p3189_p6, %p3183_p0 }
  0x2c   : > { %3193 = shalt.err (!%p3190_p9)
}
  0x2d   : > { %s3194_s29 = scalar_lea.vmem %s3443_s11, %s3430_s6  ;;  %s3340_s30 = smov [#allocation3]  }
  0x2e   : > { %p3195_p10 = scmp.ne.s32.totalorder %s3443_s11, %s3194_s29  ;;  %s3198_s5 = sshll.u32 %s3340_s30, 4  ;;  %s3199_s5 = int_to_ptr.vmem [resolvable:$false] %s3198_s5 }
  0x2f   : > { %s3200_s7 = scalar_lea.vmem %s3199_s5, 4352  ;;  %p3201_p8 = scmp.lt.s32.totalorder %s3443_s11, %s3199_s5 }
  0x30   : > { %p3196_p12 = pnand %p3195_p10, %p2032_p11  ;;  %p3202_p1 = scmp.lt.s32.totalorder %s3200_s7, %s3194_s29 }
  0x32   : > { %p3197_p13 = pneg %p3196_p12  ;;  %p3203_p2 = por %p3202_p1, %p3201_p8 }
  0x34   : > { %p3204_p3 = pnand %p3203_p2, %p3197_p13 }
  0x36   : > { %3207 = shalt.err (!%p3204_p3)
}
  0x37   : > { %s3341_s9 = smov 128   ;;  %s3342_s10 = smov 8  }
  0x38   : > { %188 = dma.hbm_to_vmem [thread:$0]  (%p2032_p11), %s3441_s14, %s3430_s6, %s3443_s11, %s3433_s8, %s3341_s9, %s3341_s9, %s3342_s10  }
  0x39 PF: > { %191 = sbr.rel (!%p3411_p4) target bundleno = 92 (0x5c), region = 32  ;;  %s192_s12 = sand.u32 (%p3411_p4), 1, %s3302_s19  }
  0x3a   : > { %s197_s13 = smul.u32 (%p3411_p4), 17, %s3306_s20  ;;  %s3477_s23 = scalar_lea.sflag (%p3411_p4), [#allocation6], %s192_s12 }
  0x3b   : > { %s3068_s15 = smul.u32 (%p3411_p4), 136, %s192_s12 }
  0x3c   : > { %s198_s16 = ssub.s32 (%p3411_p4), 33, %s197_s13 }
  0x3d   : > { %p199_p8 = scmp.lt.s32.totalorder (%p3411_p4), %s198_s16, 17  ;;  %s196_s6 = scalar_lea.vmem (%p3411_p4), [#allocation5], %s3068_s15 }
  0x40   : > { %s4647_s16 = smov (!%p199_p8, %s198_s16), 17 }
  0x41   : > { %s3474_s17 = sshll.u32 %s4647_s16, 7 }
  0x42   : > { %s203_s22 = ssub.s32 2176, %s3474_s17 }
  0x43   : > { %204 = vsyncadd %s3477_s23, %s203_s22  ;;  %p2037_p4 = scmp.ne.s32.totalorder %s3474_s17, 0  ;;  %s2055_s25 = smul.u32 2176, %s3306_s20 }
  0x44   : > { %s209_s8 = sshll.u32 %s196_s6, 4  ;;  %s3212_s7 = scalar_lea.hbm %s4555_s3, 4224  ;;  %s3487_s8 = int_to_ptr.vmem [resolvable:$true] %s209_s8 }
  0x45   : > { %s3485_s28 = scalar_lea.hbm %s4555_s3, %s2055_s25 }
  0x46   : > { %s3208_s29 = scalar_lea.hbm %s3485_s28, %s3474_s17  ;;  %p3213_p6 = scmp.lt.u32.totalorder %s3485_s28, %s4555_s3 }
  0x47   : > { %p3209_p11 = scmp.ne.s32.totalorder %s3485_s28, %s3208_s29  ;;  %p3214_p9 = scmp.lt.u32.totalorder %s3212_s7, %s3208_s29 }
  0x48   : > { %p3216_p12 = scmp.lt.u32.totalorder %s3208_s29, %s3485_s28 }
  0x49   : > { %p3210_p0 = pnand %p3209_p11, %p2037_p4  ;;  %p3215_p10 = por %p3214_p9, %p3213_p6 }
  0x4b   : > { %p3211_p5 = pneg %p3210_p0  ;;  %p3217_p13 = por %p3216_p12, %p3215_p10 }
  0x4d   : > { %p3218_p1 = pnand %p3217_p13, %p3211_p5 }
  0x4f   : > { %3221 = shalt.err (!%p3218_p1)
}
  0x50   : > { %s3222_s12 = scalar_lea.vmem %s3487_s8, %s3474_s17  ;;  %s3343_s13 = smov [#allocation5]  }
  0x51   : > { %p3223_p2 = scmp.ne.s32.totalorder %s3487_s8, %s3222_s12  ;;  %s3226_s15 = sshll.u32 %s3343_s13, 4  ;;  %s3227_s15 = int_to_ptr.vmem [resolvable:$false] %s3226_s15 }
  0x52   : > { %s3228_s16 = scalar_lea.vmem %s3227_s15, 4352  ;;  %p3229_p11 = scmp.lt.s32.totalorder %s3487_s8, %s3227_s15 }
  0x53   : > { %p3224_p3 = pnand %p3223_p2, %p2037_p4  ;;  %p3230_p0 = scmp.lt.s32.totalorder %s3228_s16, %s3222_s12 }
  0x55   : > { %p3225_p8 = pneg %p3224_p3  ;;  %p3231_p6 = por %p3230_p0, %p3229_p11 }
  0x57   : > { %p3232_p9 = pnand %p3231_p6, %p3225_p8 }
  0x59   : > { %3235 = shalt.err (!%p3232_p9)
}
  0x5a   : > { %s3344_s22 = smov 128   ;;  %s3345_s6 = smov 8  }
  0x5b   : > { %215 = dma.hbm_to_vmem [thread:$0]  (%p2037_p4), %s3485_s28, %s3474_s17, %s3487_s8, %s3477_s23, %s3344_s22, %s3344_s22, %s3345_s6  }
  0x5c PF: > { %p2041_p5 = scmp.ge.s32.totalorder %s3306_s20, 1  ;;  %p217_p10 = scmp.lt.s32.totalorder %s3306_s20, 3 }
  0x5e   : > { %p218_p12 = pnand %p2041_p5, %p217_p10 }
  0x60   : > { %221 = sbr.rel (%p218_p12) target bundleno = 624 (0x270), region = 36 }
  0x67   : > { %s223_s25 = sand.u32 1, %s3298_s18  }
  0x68   : > { %s3517_s11 = smul.u32 136, %s223_s25  ;;  %s224_s14 = scalar_lea.sflag [#allocation4], %s223_s25 }
  0x6a   : > { %s3520_s29 = scalar_lea.vmem [#allocation3], %s3517_s11 }
  0x6b   : > { %3285 = dma.done.wait (%p3417_p7), %s224_s14, 2176  }
  0x6c   : > { %3287 = vsyncadd (%p3417_p7), %s224_s14, 4294965120  ;;  %s233_s17 = scalar_lea.sflag [#allocation6], %s223_s25  ;;  %s3527_s20 = scalar_lea.vmem [#allocation5], %s3517_s11 }
  0x6d   : > { %3289 = dma.done.wait (%p3417_p7), %s233_s17, 2176  }
  0x6e   : > { %3291 = vsyncadd (%p3417_p7), %s233_s17, 4294965120  ;;  %v4569_v0 = vmov 0.0|0.0   ;;  %vm3347_vm0 = vmmov 0   ;;  %v4567_v1 = vmov 0.0   ;;  %v348_v2 = vld [vmem:[%s4553_s1] sm:$0xff]  ;;  %v349_v3 = vld [vmem:[%s4553_s1 + $0x8] sm:$0xff] }
  0x6f   : > { %2753 = vmatprep.subr.bf16.mxu1 %v4569_v0  ;;  %2825 = vmatprep.subr.bf16.mxu0 %v4569_v0  ;;  %v3548_v4 = vld [vmem:[%s4553_s1 + $0x10] sm:$0xff]  ;;  %v367_v5 = vand.u32 4294901760, %v348_v2  ;;  %v370_v6 = vand.u32 4294901760, %v349_v3  ;;  %v3553_v7 = vld [vmem:[%s4553_s1 + $0x18] sm:$0xff]  ;;  %v3560_v10 = vld [vmem:[%s4553_s1 + $0x20] sm:$0xff]  ;;  %vm1695_vm1 = vcmask 31744  }
  0x70   : > { %2287 = vmatprep.mubr.msk.f32.mxu1 %vm3347_vm0, %v4567_v1  ;;  %2536 = vmatprep.mubr.msk.f32.mxu0 %vm3347_vm0, %v4567_v1  ;;  %v373_v8 = vand.u32 4294901760, %v3548_v4  ;;  %v376_v9 = vand.u32 4294901760, %v3553_v7  ;;  %v3565_v11 = vld [vmem:[%s4553_s1 + $0x28] sm:$0xff]  ;;  %v379_v14 = vand.u32 4294901760, %v3560_v10  ;;  %v3580_v16 = vld [vmem:[%s4553_s1 + $0x30] sm:$0xff]  ;;  %v3585_v17 = vld [vmem:[%s4553_s1 + $0x38] sm:$0xff] }
  0x71   : > { %v3567_v12 = vpack.c.bf16 %v370_v6, %v367_v5  ;;  %v382_v15 = vand.u32 4294901760, %v3565_v11  ;;  %v280_v18 = vld [vmem:[%s3527_s20] sm:$0xff]  ;;  %v297_v19 = vld [vmem:[%s3520_s29] sm:$0xff]  ;;  %v281_v20 = vld [vmem:[%s3527_s20 + $0x8] sm:$0xff]  ;;  %v385_v23 = vand.u32 4294901760, %v3580_v16  ;;  %v388_v24 = vand.u32 4294901760, %v3585_v17 }
  0x72   : > { %v3571_v13 = vpack.c.bf16 %v376_v9, %v373_v8  ;;  %v298_v21 = vld [vmem:[%s3520_s29 + $0x8] sm:$0xff]  ;;  %v3604_v25 = vld [vmem:[%s4553_s1 + $0x40] sm:$0xff]  ;;  %v314_v27 = vsub.f32 %v280_v18, %v297_v19  ;;  %v299_v34 = vld [vmem:[%s3520_s29 + $0x10] sm:$0xff]  ;;  %v3621_v35 = vsub.f32 %v348_v2, %v367_v5  ;;  %v3623_v36 = vsub.f32 %v349_v3, %v370_v6  ;;  %p4636_p7 = scmp.ne.s32.totalorder %s4585_s27, 0 }
  0x73   : > { %2755 = vmatpush3.bf16.msra.mxu1 %v3567_v12  ;;  %2827 = vmatpush3.bf16.msra.mxu0 %v3567_v12  ;;  %v3595_v22 = vpack.c.bf16 %v382_v15, %v379_v14  ;;  %v3609_v26 = vld [vmem:[%s4553_s1 + $0x48] sm:$0xff]  ;;  %v315_v28 = vsub.f32 %v281_v20, %v298_v21  ;;  %v3615_v30 = vpack.c.bf16 %v388_v24, %v385_v23  ;;  %v391_v31 = vand.u32 4294901760, %v3604_v25  ;;  %v3630_v37 = vld [vmem:[%s4553_s1 + $0x50] sm:$0xff]  ;;  %v3635_v38 = vld [vmem:[%s4553_s1 + $0x58] sm:$0xff]  ;;  %s2056_s6 = smul.u32 (%p4636_p7), 136, %s3396_s0 }
  0x74   : > { %2756 = vmatprep.subr.bf16.mxu1 %v4569_v0  ;;  %2828 = vmatprep.subr.bf16.mxu0 %v4569_v0  ;;  %v331_v29 = vmul.f32 %v314_v27, %v314_v27  ;;  %v394_v32 = vand.u32 4294901760, %v3609_v26  ;;  %v282_v33 = vld [vmem:[%s3527_s20 + $0x10] sm:$0xff]  ;;  %v283_v42 = vld [vmem:[%s3527_s20 + $0x18] sm:$0xff]  ;;  %v300_v43 = vld [vmem:[%s3520_s29 + $0x18] sm:$0xff]  ;;  %v397_v45 = vand.u32 4294901760, %v3630_v37  ;;  %v400_v46 = vand.u32 4294901760, %v3635_v38 }
  0x75   : > { %v332_v39 = vmul.f32 %v315_v28, %v315_v28  ;;  %v316_v41 = vsub.f32 %v282_v33, %v299_v34  ;;  %v3656_v47 = vld [vmem:[%s4553_s1 + $0x60] sm:$0xff]  ;;  %v3661_v48 = vld [vmem:[%s4553_s1 + $0x68] sm:$0xff]  ;;  %v620_v49 = vand.u32 4294901760, %v3621_v35  ;;  %v627_v50 = vand.u32 4294901760, %v3623_v36  ;;  %v284_v57 = vld [vmem:[%s3527_s20 + $0x20] sm:$0xff]  ;;  %s4459_s23 = scalar_lea.vmem (%p4636_p7), %s4556_s4, %s2056_s6  }
  0x76   : > { %v3637_v40 = vand.u32 4294901760, %v331_v29  ;;  %v3647_v44 = vpack.c.bf16 %v394_v32, %v391_v31  ;;  %v317_v52 = vsub.f32 %v283_v42, %v300_v43  ;;  %v3668_v53 = vsub.f32 %v3548_v4, %v373_v8  ;;  %v301_v58 = vld [vmem:[%s3520_s29 + $0x20] sm:$0xff]  ;;  %v3694_v63 = vld [vmem:[%s4553_s1 + $0x70] sm:$0xff]  ;;  %v3699_v2 = vld [vmem:[%s4553_s1 + $0x78] sm:$0xff] }
  0x77   : > { %2758 = vmatpush3.bf16.msra.mxu1 %v3571_v13  ;;  %2830 = vmatpush3.bf16.msra.mxu0 %v3571_v13  ;;  %v3665_v51 = vand.u32 4294901760, %v332_v39  ;;  %v3671_v54 = vsub.f32 %v3553_v7, %v376_v9  ;;  %v333_v56 = vmul.f32 %v316_v41, %v316_v41  ;;  %v3679_v59 = vsub.f32 %v3560_v10, %v379_v14  ;;  %v285_v18 = vld [vmem:[%s3527_s20 + $0x28] sm:$0xff]  ;;  %v302_v19 = vld [vmem:[%s3520_s29 + $0x28] sm:$0xff]  ;;  %v286_v27 = vld [vmem:[%s3527_s20 + $0x30] sm:$0xff] }
  0x78   : > { %2759 = vmatprep.subr.bf16.mxu1 %v4569_v0  ;;  %2831 = vmatprep.subr.bf16.mxu0 %v4569_v0  ;;  %v3674_v55 = vsub.f32 %v331_v29, %v3637_v40  ;;  %v3687_v60 = vpack.c.bf16 %v400_v46, %v397_v45  ;;  %v403_v61 = vand.u32 4294901760, %v3656_v47  ;;  %v406_v62 = vand.u32 4294901760, %v3661_v48  ;;  %v303_v28 = vld [vmem:[%s3520_s29 + $0x30] sm:$0xff] }
  0x79   : > { %v3704_v3 = vsub.f32 %v3565_v11, %v382_v15  ;;  %v621_v4 = vsub.f32 %v3621_v35, %v620_v49  ;;  %v628_v5 = vsub.f32 %v3623_v36, %v627_v50  ;;  %v3715_v6 = vsub.f32 %v3580_v16, %v385_v23 }
  0x7a   : > { %4586 = vst [vmem:[#allocation10_spill] sm:$0xff] %v3674_v55  ;;  %v3718_v7 = vsub.f32 %v332_v39, %v3665_v51  ;;  %v334_v8 = vmul.f32 %v317_v52, %v317_v52  ;;  %v318_v9 = vsub.f32 %v284_v57, %v301_v58  ;;  %v409_v10 = vand.u32 4294901760, %v3694_v63 }
  0x7b   : > { %2761 = vmatpush3.bf16.msra.mxu1 %v3595_v22  ;;  %2833 = vmatpush3.bf16.msra.mxu0 %v3595_v22  ;;  %v4557_v11 = vand.u32 4294901760, %v3699_v2  ;;  %v449_v14 = vand.u32 4294901760, %v3674_v55  ;;  %v3723_v15 = vand.u32 4294901760, %v333_v56  ;;  %v3730_v16 = vsub.f32 %v3585_v17, %v388_v24 }
  0x7c   : > { %2762 = vmatprep.subr.bf16.mxu1 %v4569_v0  ;;  %2834 = vmatprep.subr.bf16.mxu0 %v4569_v0  ;;  %4587 = vst [vmem:[#allocation11_spill] sm:$0xff] %v3718_v7  ;;  %v3738_v20 = vpack.c.bf16 %v406_v62, %v403_v61  ;;  %v634_v21 = vand.u32 4294901760, %v3668_v53  ;;  %v641_v23 = vand.u32 4294901760, %v3671_v54  ;;  %v3747_v17 = vsub.f32 %v3604_v25, %v391_v31 }
  0x7d   : > { %v3752_v24 = vsub.f32 %v3609_v26, %v394_v32  ;;  %v622_v29 = vand.u32 4294901760, %v621_v4  ;;  %v629_v33 = vand.u32 4294901760, %v628_v5  ;;  %v4558_v34 = vand.u32 4294901760, %v3718_v7  ;;  %v287_v4 = vld [vmem:[%s3527_s20 + $0x38] sm:$0xff] }
  0x7e   : > { %v3757_v39 = vand.u32 4294901760, %v334_v8  ;;  %v335_v41 = vmul.f32 %v318_v9, %v318_v9  ;;  %v319_v25 = vsub.f32 %v285_v18, %v302_v19  ;;  %v3763_v26 = vpack.c.bf16 %v4557_v11, %v409_v10 }
  0x7f   : > { %2764 = vmatpush3.bf16.msra.mxu1 %v3615_v30  ;;  %2836 = vmatpush3.bf16.msra.mxu0 %v3615_v30  ;;  %v450_v31 = vsub.f32 %v3674_v55, %v449_v14  ;;  %v3769_v32 = vsub.f32 %v333_v56, %v3723_v15  ;;  %v320_v42 = vsub.f32 %v286_v27, %v303_v28  ;;  %v648_v57 = vand.u32 4294901760, %v3679_v59  ;;  %v304_v56 = vld [vmem:[%s3520_s29 + $0x38] sm:$0xff] }
  0x80   : > { %2765 = vmatprep.subr.bf16.mxu1 %v4569_v0  ;;  %2837 = vmatprep.subr.bf16.mxu0 %v4569_v0  ;;  %4588 = vst [vmem:[#allocation12_spill] sm:$0xff] %v3763_v26  ;;  %v635_v43 = vsub.f32 %v3668_v53, %v634_v21  ;;  %v642_v52 = vsub.f32 %v3671_v54, %v641_v23  ;;  %v4559_v58 = vand.u32 4294901760, %v3704_v3  ;;  %v3801_v28 = vand.u32 4294901760, %v335_v41 }
  0x81   : > { %4589 = vst [vmem:[#allocation13_spill] sm:$0xff] %v3769_v32  ;;  %v3786_v5 = vsub.f32 %v3630_v37, %v397_v45  ;;  %v3791_v9 = vsub.f32 %v3635_v38, %v400_v46  ;;  %v2778_v18 = vpack.c.bf16 %v629_v33, %v622_v29  ;;  %v460_v19 = vsub.f32 %v3718_v7, %v4558_v34 }
  0x82   : > { %v3799_v27 = vsub.f32 %v334_v8, %v3757_v39  ;;  %v336_v37 = vmul.f32 %v319_v25, %v319_v25  ;;  %v451_v45 = vand.u32 4294901760, %v450_v31  ;;  %v4563_v11 = vand.u32 4294901760, %v3769_v32 }
  0x83   : > { %2767 = vmatpush3.bf16.msra.mxu1 %v3647_v44  ;;  %2839 = vmatpush3.bf16.msra.mxu0 %v3647_v44  ;;  %v337_v38 = vmul.f32 %v320_v42, %v320_v42  ;;  %v321_v46 = vsub.f32 %v287_v4, %v304_v56  ;;  %v636_v29 = vand.u32 4294901760, %v635_v43  ;;  %v643_v33 = vand.u32 4294901760, %v642_v52 }
  0x84   : > { %2768 = vmatprep.subr.bf16.mxu1 %v4569_v0  ;;  %2840 = vmatprep.subr.bf16.mxu0 %v4569_v0  ;;  %4590 = vst [vmem:[#allocation14_spill] sm:$0xff] %v3799_v27  ;;  %v649_v34 = vsub.f32 %v3679_v59, %v648_v57  ;;  %v656_v8 = vsub.f32 %v3704_v3, %v4559_v58  ;;  %v4561_v42 = vand.u32 4294901760, %v3715_v6  ;;  %v4560_v43 = vand.u32 4294901760, %v3730_v16  ;;  %v305_v58 = vld [vmem:[%s3520_s29 + $0x40] sm:$0xff] }
  0x85   : > { %v3815_v25 = vsub.f32 %v3656_v47, %v403_v61  ;;  %v2850_v31 = vpack.c.bf16 %v627_v50, %v620_v49  ;;  %v3828_v52 = vsub.f32 %v3661_v48, %v406_v62  ;;  %v4562_v47 = vand.u32 4294901760, %v3799_v27 }
  0x86   : > { %v3832_v61 = vsub.f32 %v335_v41, %v3801_v28  ;;  %v3834_v4 = vand.u32 4294901760, %v336_v37  ;;  %v461_v49 = vand.u32 4294901760, %v460_v19  ;;  %v470_v50 = vsub.f32 %v3769_v32, %v4563_v11  ;;  %v288_v19 = vld [vmem:[%s3527_s20 + $0x40] sm:$0xff] }
  0x87   : > { %2770 = vmatpush3.bf16.msra.mxu1 %v3687_v60  ;;  %2842 = vmatpush3.bf16.msra.mxu0 %v3687_v60  ;;  %v3841_v48 = vand.u32 4294901760, %v337_v38  ;;  %v338_v62 = vmul.f32 %v321_v46, %v321_v46  ;;  %v2781_v41 = vpack.c.bf16 %v643_v33, %v636_v29  ;;  %v2853_v56 = vpack.c.bf16 %v641_v23, %v634_v21 }
  0x88   : > { %2771 = vmatprep.subr.bf16.mxu1 %v4569_v0  ;;  %2843 = vmatprep.subr.bf16.mxu0 %v4569_v0  ;;  %4591 = vst [vmem:[#allocation15_spill] sm:$0xff] %v3832_v61  ;;  %v670_v46 = vsub.f32 %v3730_v16, %v4560_v43  ;;  %v4565_v29 = vand.u32 4294901760, %v3747_v17  ;;  %v4564_v21 = vand.u32 4294901760, %v3752_v24  ;;  %v3864_v23 = vsub.f32 %v3694_v63, %v409_v10 }
  0x89   : > { %v4566_v33 = vand.u32 4294901760, %v3832_v61  ;;  %v471_v63 = vand.u32 4294901760, %v470_v50  ;;  %v3878_v10 = vsub.f32 %v337_v38, %v3841_v48  ;;  %v3880_v43 = vand.u32 4294901760, %v338_v62  ;;  %v306_v50 = vld [vmem:[%s3520_s29 + $0x48] sm:$0xff] }
  0x8a   : > { %v4571_v38 = vand.u32 4294901760, %v3786_v5  ;;  %v4579_v55 = vand.u32 4294901760, %v3864_v23 }
  0x8b   : > { %2773 = vmatpush3.bf16.msra.mxu1 %v3738_v20  ;;  %2845 = vmatpush3.bf16.msra.mxu0 %v3738_v20 }
  0x8c   : > { %2774 = vmatprep.subr.bf16.mxu1 %v4569_v0  ;;  %2846 = vmatprep.subr.bf16.mxu0 %v4569_v0 }
  0x8f   : > { %2776 = vmatpush3.bf16.msra.mxu1 %v3763_v26  ;;  %2848 = vmatpush3.bf16.msra.mxu0 %v3763_v26 }
  0x90   : > { %2777 = vmatprep.subr.bf16.mxu1 %v4569_v0  ;;  %2849 = vmatprep.subr.bf16.mxu0 %v4569_v0 }
  0x92   : > { %2288 = vmatmul.mubr.f32.vlgmr.msra.gmra.mrb[0].mxu1 %v451_v45  ;;  %2537 = vmatmul.mubr.f32.vlgmr.msra.gmra.mrb[0].mxu0 %v449_v14  ;;  %v650_v45 = vand.u32 4294901760, %v649_v34  ;;  %v657_v14 = vand.u32 4294901760, %v656_v8  ;;  %v480_v34 = vsub.f32 %v3799_v27, %v4562_v47  ;;  %v3873_v8 = vsub.f32 %v336_v37, %v3834_v4 }
  0x93   : > { %2779 = vmatpush3.bf16.msra.mxu1 %v2778_v18  ;;  %2290 = vmatprep.mubr.msk.f32.mxu1 %vm3347_vm0, %v4567_v1  ;;  %v663_v18 = vsub.f32 %v3715_v6, %v4561_v42  ;;  %v322_v42 = vsub.f32 %v288_v19, %v305_v58  ;;  %v4594_v37 = vand.u32 4294901760, %v3704_v3  ;;  %v671_v19 = vand.u32 4294901760, %v670_v46 }
  0x94   : > { %2539 = vmatprep.mubr.msk.f32.mxu0 %vm3347_vm0, %v4567_v1  ;;  %2851 = vmatpush3.bf16.msra.mxu0 %v2850_v31  ;;  %4592 = vst [vmem:[#allocation16_spill] sm:$0xff] %v3873_v8  ;;  %v4593_v31 = vand.u32 4294901760, %v3718_v7  ;;  %v2784_v47 = vpack.c.bf16 %v657_v14, %v650_v45  ;;  %v677_v45 = vsub.f32 %v3747_v17, %v4565_v29  ;;  %v4595_v14 = vand.u32 4294901760, %v3699_v2  ;;  %v307_v29 = vld [vmem:[%s3520_s29 + $0x50] sm:$0xff] }
  0x95   : > { %2780 = vmatprep.subr.bf16.mxu1 %v4569_v0  ;;  %2852 = vmatprep.subr.bf16.mxu0 %v4569_v0  ;;  %v664_v58 = vand.u32 4294901760, %v663_v18  ;;  %v481_v11 = vand.u32 4294901760, %v480_v34  ;;  %v4596_v18 = vand.u32 4294901760, %v3769_v32  ;;  %v339_v34 = vmul.f32 %v322_v42, %v322_v42 }
  0x96   : > { %2291 = vmatmul.mubr.f32.gmra.mrb[2].mxu1 %v461_v49  ;;  %2540 = vmatmul.mubr.f32.gmra.mrb[2].mxu0 %v4593_v31  ;;  %v2856_v49 = vpack.c.bf16 %v4594_v37, %v648_v57  ;;  %v289_v31 = vld [vmem:[%s3527_s20 + $0x48] sm:$0xff]  ;;  %v684_v57 = vsub.f32 %v3752_v24, %v4564_v21  ;;  %v3903_v37 = vsub.f32 %v3699_v2, %v4595_v14  ;;  %v290_v21 = vld [vmem:[%s3527_s20 + $0x50] sm:$0xff]  ;;  %v4599_v42 = vand.u32 4294901760, %v3791_v9 }
  0x97   : > { %2293 = vmatprep.mubr.msk.f32.mxu1 %vm3347_vm0, %v4567_v1  ;;  %2542 = vmatprep.mubr.msk.f32.mxu0 %vm3347_vm0, %v4567_v1  ;;  %v3915_v2 = vsub.f32 %v338_v62, %v3880_v43  ;;  %v323_v14 = vsub.f32 %v289_v31, %v306_v50  ;;  %v691_v62 = vsub.f32 %v3786_v5, %v4571_v38  ;;  %v4577_v50 = vand.u32 4294901760, %v3815_v25 }
  0x98   : > { %2782 = vmatpush3.bf16.msra.mxu1 %v2781_v41  ;;  %2854 = vmatpush3.bf16.msra.mxu0 %v2853_v56  ;;  %v490_v41 = vsub.f32 %v3832_v61, %v4566_v33  ;;  %v4598_v33 = vand.u32 4294901760, %v3730_v16  ;;  %v698_v31 = vsub.f32 %v3791_v9, %v4599_v42  ;;  %v2787_v46 = vpack.c.bf16 %v671_v19, %v664_v58 }
  0x99   : > { %2783 = vmatprep.subr.bf16.mxu1 %v4569_v0  ;;  %2855 = vmatprep.subr.bf16.mxu0 %v4569_v0  ;;  %v685_v0 = vand.u32 4294901760, %v684_v57  ;;  %v4601_v32 = vmov 0.0|0.0   ;;  %v324_v42 = vsub.f32 %v290_v21, %v307_v29  ;;  %v340_v57 = vmul.f32 %v323_v14, %v323_v14 }
  0x9a   : > { %2294 = vmatmul.mubr.f32.gmra.mrb[4].mxu1 %v471_v63  ;;  %2543 = vmatmul.mubr.f32.gmra.mrb[4].mxu0 %v4596_v18  ;;  %v4597_v63 = vand.u32 4294901760, %v3715_v6  ;;  %v4604_v56 = vmov 0.0   ;;  %v4606_v29 = vand.u32 4294901760, %v3752_v24  ;;  %v705_v19 = vsub.f32 %v3815_v25, %v4577_v50  ;;  %v309_v50 = vld [vmem:[%s3520_s29 + $0x60] sm:$0xff] }
  0x9b   : > { %2296 = vmatprep.mubr.msk.f32.mxu1 %vm3347_vm0, %v4567_v1  ;;  %2545 = vmatprep.mubr.msk.f32.mxu0 %vm3347_vm0, %v4567_v1  ;;  %v678_v1 = vand.u32 4294901760, %v677_v45  ;;  %v3948_v45 = vand.u32 4294901760, %v339_v34  ;;  %v4578_v26 = vand.u32 4294901760, %v3903_v37 }
  0x9c   : > { %v2859_v18 = vpack.c.bf16 %v4598_v33, %v4597_v63  ;;  %2785 = vmatpush3.bf16.msra.mxu1 %v2784_v47  ;;  %2857 = vmatpush3.bf16.msra.mxu0 %v2856_v49  ;;  %v491_v33 = vand.u32 4294901760, %v490_v41  ;;  %v4600_v63 = vand.u32 4294901760, %v3873_v8  ;;  %v4602_v47 = vand.u32 4294901760, %v3799_v27  ;;  %v291_v41 = vld [vmem:[%s3527_s20 + $0x58] sm:$0xff] }
  0x9d   : > { %2786 = vmatprep.subr.bf16.mxu1 %v4601_v32  ;;  %2858 = vmatprep.subr.bf16.mxu0 %v4601_v32  ;;  %v4603_v49 = vand.u32 4294901760, %v3878_v10  ;;  %v2790_v14 = vpack.c.bf16 %v685_v0, %v678_v1  ;;  %v4607_v27 = vand.u32 4294901760, %v3828_v52  ;;  %v4609_v1 = vand.u32 4294901760, %v3915_v2 }
  0x9e   : > { %v500_v38 = vsub.f32 %v3873_v8, %v4600_v63  ;;  %2297 = vmatmul.mubr.f32.gmra.mrb[6].mxu1 %v481_v11  ;;  %2546 = vmatmul.mubr.f32.gmra.mrb[6].mxu0 %v4602_v47  ;;  %v308_v63 = vld [vmem:[%s3520_s29 + $0x58] sm:$0xff]  ;;  %v4605_v11 = vand.u32 4294901760, %v3747_v17  ;;  %v692_v47 = vand.u32 4294901760, %v691_v62  ;;  %v341_v62 = vmul.f32 %v324_v42, %v324_v42 }
  0x9f   : > { %v3945_v58 = vsub.f32 %v3878_v10, %v4603_v49  ;;  %2299 = vmatprep.mubr.msk.f32.mxu1 %vm3347_vm0, %v4604_v56  ;;  %2548 = vmatprep.mubr.msk.f32.mxu0 %vm3347_vm0, %v4604_v56  ;;  %v699_v49 = vand.u32 4294901760, %v698_v31  ;;  %v712_v7 = vsub.f32 %v3828_v52, %v4607_v27  ;;  %v325_v31 = vsub.f32 %v291_v41, %v308_v63 }
  0xa0   : > { %v2862_v21 = vpack.c.bf16 %v4606_v29, %v4605_v11  ;;  %2788 = vmatpush3.bf16.msra.mxu1 %v2787_v46  ;;  %2860 = vmatpush3.bf16.msra.mxu0 %v2859_v18  ;;  %v501_v11 = vand.u32 4294901760, %v500_v38  ;;  %v4608_v46 = vand.u32 4294901760, %v3832_v61  ;;  %v3976_v27 = vsub.f32 %v3915_v2, %v4609_v1  ;;  %v292_v29 = vld [vmem:[%s3527_s20 + $0x60] sm:$0xff] }
  0xa1   : > { %2789 = vmatprep.subr.bf16.mxu1 %v4601_v32  ;;  %2861 = vmatprep.subr.bf16.mxu0 %v4601_v32  ;;  %v511_v0 = vand.u32 4294901760, %v3945_v58  ;;  %v3979_v18 = vsub.f32 %v339_v34, %v3948_v45  ;;  %v3981_v38 = vand.u32 4294901760, %v340_v57  ;;  %v4610_v42 = vand.u32 4294901760, %v3786_v5 }
  0xa2   : > { %2300 = vmatmul.mubr.f32.gmra.mrb[8].mxu1 %v491_v33  ;;  %2549 = vmatmul.mubr.f32.gmra.mrb[8].mxu0 %v4608_v46  ;;  %v2793_v33 = vpack.c.bf16 %v699_v49, %v692_v47  ;;  %v4611_v58 = vand.u32 4294901760, %v3791_v9  ;;  %v706_v63 = vand.u32 4294901760, %v705_v19  ;;  %v713_v46 = vand.u32 4294901760, %v712_v7 }
  0xa3   : > { %2302 = vmatprep.mubr.msk.f32.mxu1 %vm3347_vm0, %v4604_v56  ;;  %2551 = vmatprep.mubr.msk.f32.mxu0 %vm3347_vm0, %v4604_v56  ;;  %v719_v1 = vsub.f32 %v3864_v23, %v4579_v55  ;;  %v726_v47 = vsub.f32 %v3903_v37, %v4578_v26  ;;  %v4003_v19 = vand.u32 4294901760, %v341_v62  ;;  %v326_v7 = vsub.f32 %v292_v29, %v309_v50  ;;  %v293_v50 = vld [vmem:[%s3527_s20 + $0x68] sm:$0xff] }
  0xa4   : > { %v2865_v41 = vpack.c.bf16 %v4611_v58, %v4610_v42  ;;  %2791 = vmatpush3.bf16.msra.mxu1 %v2790_v14  ;;  %2863 = vmatpush3.bf16.msra.mxu0 %v2862_v21  ;;  %v342_v14 = vmul.f32 %v325_v31, %v325_v31  ;;  %v4612_v42 = vand.u32 4294901760, %v3873_v8  ;;  %v529_v58 = vand.u32 4294901760, %v3979_v18 }
  0xa5   : > { %2792 = vmatprep.subr.bf16.mxu1 %v4601_v32  ;;  %2864 = vmatprep.subr.bf16.mxu0 %v4601_v32  ;;  %v4013_v49 = vsub.f32 %v340_v57, %v3981_v38  ;;  %v2796_v31 = vpack.c.bf16 %v713_v46, %v706_v63  ;;  %v4613_v34 = vand.u32 4294901760, %v3815_v25  ;;  %v4614_v21 = vand.u32 4294901760, %v3828_v52 }
  0xa6   : > { %2303 = vmatmul.mubr.f32.gmra.mrb[10].mxu1 %v501_v11  ;;  %2552 = vmatmul.mubr.f32.gmra.mrb[10].mxu0 %v4612_v42  ;;  %v310_v11 = vld [vmem:[%s3520_s29 + $0x68] sm:$0xff]  ;;  %v720_v55 = vand.u32 4294901760, %v719_v1  ;;  %v727_v8 = vand.u32 4294901760, %v726_v47  ;;  %v4036_v29 = vsub.f32 %v341_v62, %v4003_v19  ;;  %v4038_v61 = vand.u32 4294901760, %v342_v14  ;;  %v294_v62 = vld [vmem:[%s3527_s20 + $0x70] sm:$0xff]  ;;  %v311_v1 = vld [vmem:[%s3520_s29 + $0x70] sm:$0xff] }
  0xa7   : > { %2305 = vmatprep.mubr.msk.f32.mxu1 %vm3347_vm0, %v4604_v56  ;;  %2554 = vmatprep.mubr.msk.f32.mxu0 %vm3347_vm0, %v4604_v56  ;;  %v2868_v26 = vpack.c.bf16 %v4614_v21, %v4613_v34  ;;  %v343_v57 = vmul.f32 %v326_v7, %v326_v7  ;;  %v530_v63 = vsub.f32 %v3979_v18, %v529_v58  ;;  %v539_v34 = vand.u32 4294901760, %v4013_v49 }
  0xa8   : > { %2794 = vmatpush3.bf16.msra.mxu1 %v2793_v33  ;;  %2866 = vmatpush3.bf16.msra.mxu0 %v2865_v41  ;;  %4615 = vst [vmem:[#allocation17_spill] sm:$0xff] %v4036_v29  ;;  %v4616_v33 = vand.u32 4294901760, %v3878_v10  ;;  %v521_v41 = vand.u32 4294901760, %v3976_v27  ;;  %v327_v46 = vsub.f32 %v293_v50, %v310_v11  ;;  %v4617_v47 = vand.u32 4294901760, %v3864_v23 }
  0xa9   : > { %2795 = vmatprep.subr.bf16.mxu1 %v4601_v32  ;;  %2867 = vmatprep.subr.bf16.mxu0 %v4601_v32  ;;  %v4618_v27 = vand.u32 4294901760, %v3903_v37  ;;  %v549_v21 = vand.u32 4294901760, %v4036_v29  ;;  %v4059_v50 = vsub.f32 %v342_v14, %v4038_v61  ;;  %v4061_v11 = vand.u32 4294901760, %v343_v57  ;;  %v295_v14 = vld [vmem:[%s3527_s20 + $0x78] sm:$0xff] }
  0xaa   : > { %2306 = vmatmul.mubr.f32.gmra.mrb[12].mxu1 %v511_v0  ;;  %2555 = vmatmul.mubr.f32.gmra.mrb[12].mxu0 %v4616_v33  ;;  %v2799_v0 = vpack.c.bf16 %v727_v8, %v720_v55  ;;  %v4619_v55 = vand.u32 4294901760, %v3915_v2  ;;  %v540_v8 = vsub.f32 %v4013_v49, %v539_v34  ;;  %v328_v33 = vsub.f32 %v294_v62, %v311_v1 }
  0xab   : > { %2308 = vmatprep.mubr.msk.f32.mxu1 %vm3347_vm0, %v4604_v56  ;;  %2557 = vmatprep.mubr.msk.f32.mxu0 %vm3347_vm0, %v4604_v56  ;;  %v2871_v7 = vpack.c.bf16 %v4618_v27, %v4617_v47  ;;  %v312_v47 = vld [vmem:[%s3520_s29 + $0x78] sm:$0xff]  ;;  %v4077_v27 = vsub.f32 %v343_v57, %v4061_v11  ;;  %v313_v57 = vld [vmem:[%s3520_s29 + $0x80] sm:$0xff]  ;;  %s364_s29 = sld [smem:[#allocation2]] }
  0xac   : > { %2797 = vmatpush3.bf16.msra.mxu1 %v2796_v31  ;;  %2869 = vmatpush3.bf16.msra.mxu0 %v2868_v26  ;;  %v531_v26 = vand.u32 4294901760, %v530_v63  ;;  %v344_v31 = vmul.f32 %v327_v46, %v327_v46  ;;  %v559_v63 = vand.u32 4294901760, %v4059_v50  ;;  %v541_v46 = vand.u32 4294901760, %v540_v8 }
  0xad   : > { %2798 = vmatprep.subr.bf16.mxu1 %v4601_v32  ;;  %2870 = vmatprep.subr.bf16.mxu0 %v4601_v32  ;;  %v345_v1 = vmul.f32 %v328_v33, %v328_v33 }
  0xae   : > { %2309 = vmatmul.mubr.f32.gmra.mrb[14].mxu1 %v521_v41  ;;  %2558 = vmatmul.mubr.f32.gmra.mrb[14].mxu0 %v4619_v55  ;;  %v550_v41 = vsub.f32 %v4036_v29, %v549_v21  ;;  %v4081_v62 = vand.u32 4294901760, %v344_v31  ;;  %v560_v42 = vsub.f32 %v4059_v50, %v559_v63  ;;  %v569_v29 = vand.u32 4294901760, %v4077_v27 }
  0xaf   : > { %2311 = vmatprep.mubr.msk.f32.mxu1 %vm3347_vm0, %v4604_v56  ;;  %2560 = vmatprep.mubr.msk.f32.mxu0 %vm3347_vm0, %v4604_v56 }
  0xb0   : > { %2800 = vmatpush3.bf16.msra.mxu1 %v2799_v0  ;;  %2872 = vmatpush3.bf16.msra.mxu0 %v2871_v7  ;;  %v329_v0 = vsub.f32 %v295_v14, %v312_v47  ;;  %v296_v7 = vld [vmem:[%s3527_s20 + $0x80] sm:$0xff]  ;;  %v551_v55 = vand.u32 4294901760, %v550_v41  ;;  %v561_v14 = vand.u32 4294901760, %v560_v42  ;;  %v570_v47 = vsub.f32 %v4077_v27, %v569_v29  ;;  %s4400_s20 = scalar_lea.vmem [#allocation7], %s3517_s11   ;;  %s1720_s11 = smul.u32 (%p4636_p7), 17, %s3396_s0 }
  0xb1   : > { %2801 = vmatprep.subr.bf16.mxu1 %v4601_v32  ;;  %2873 = vmatprep.subr.bf16.mxu0 %v4601_v32  ;;  %v330_v33 = vsub.f32 %v296_v7, %v313_v57 }
  0xb2   : > { %2312 = vmatmul.mubr.f32.gmra.mrb[16].mxu1 %v531_v26  ;;  %2561 = vmatmul.mubr.f32.gmra.mrb[16].mxu0 %v529_v58  ;;  %v4092_v58 = vsub.f32 %v344_v31, %v4081_v62  ;;  %v4094_v26 = vand.u32 4294901760, %v345_v1  ;;  %v346_v8 = vmul.f32 %v329_v0, %v329_v0  ;;  %v571_v0 = vand.u32 4294901760, %v570_v47  ;;  %s1721_s25 = ssub.s32 (%p4636_p7), 33, %s1720_s11 }
  0xb3   : > { %2314 = vmatprep.mubr.msk.f32.mxu1 %vm3347_vm0, %v4604_v56  ;;  %2563 = vmatprep.mubr.msk.f32.mxu0 %vm3347_vm0, %v4604_v56  ;;  %p1722_p4 = scmp.lt.s32.totalorder (%p4636_p7), %s1721_s25, 17 }
  0xb4   : > { %v4103_v31 = vsub.f32 %v345_v1, %v4094_v26  ;;  %v4105_v41 = vand.u32 4294901760, %v346_v8 }
  0xb6   : > { %2315 = vmatmul.mubr.f32.gmra.mrb[18].mxu1 %v541_v46  ;;  %2564 = vmatmul.mubr.f32.gmra.mrb[18].mxu0 %v539_v34  ;;  %v579_v34 = vand.u32 4294901760, %v4092_v58  ;;  %v347_v46 = vmul.f32 %v330_v33, %v330_v33  ;;  %v4114_v7 = vsub.f32 %v346_v8, %v4105_v41 }
  0xb7   : > { %2317 = vmatprep.mubr.msk.f32.mxu1 %vm3347_vm0, %v4604_v56  ;;  %2566 = vmatprep.mubr.msk.f32.mxu0 %vm3347_vm0, %v4604_v56 }
  0xb8   : > { %v580_v42 = vsub.f32 %v4092_v58, %v579_v34  ;;  %v4116_v1 = vand.u32 4294901760, %v347_v46 }
  0xba   : > { %2318 = vmatmul.mubr.f32.gmra.mrb[20].mxu1 %v551_v55  ;;  %2567 = vmatmul.mubr.f32.gmra.mrb[20].mxu0 %v549_v21  ;;  %v589_v21 = vand.u32 4294901760, %v4103_v31  ;;  %v581_v57 = vand.u32 4294901760, %v580_v42  ;;  %v599_v55 = vand.u32 4294901760, %v4114_v7  ;;  %v4125_v33 = vsub.f32 %v347_v46, %v4116_v1 }
  0xbb   : > { %2320 = vmatprep.mubr.msk.f32.mxu1 %vm3347_vm0, %v4604_v56  ;;  %2569 = vmatprep.mubr.msk.f32.mxu0 %vm3347_vm0, %v4604_v56 }
  0xbe   : > { %2321 = vmatmul.mubr.f32.gmra.mrb[22].mxu1 %v561_v14  ;;  %2570 = vmatmul.mubr.f32.gmra.mrb[22].mxu0 %v559_v63  ;;  %v590_v63 = vsub.f32 %v4103_v31, %v589_v21  ;;  %v600_v14 = vsub.f32 %v4114_v7, %v599_v55 }
  0xbf   : > { %2323 = vmatprep.mubr.msk.f32.mxu1 %vm3347_vm0, %v4604_v56  ;;  %2572 = vmatprep.mubr.msk.f32.mxu0 %vm3347_vm0, %v4604_v56 }
  0xc0   : > { %v591_v8 = vand.u32 4294901760, %v590_v63  ;;  %v601_v47 = vand.u32 4294901760, %v600_v14 }
  0xc2   : > { %2324 = vmatmul.mubr.f32.gmra.mrb[24].mxu1 %v571_v0  ;;  %2573 = vmatmul.mubr.f32.gmra.mrb[24].mxu0 %v569_v29  ;;  %v609_v29 = vand.u32 4294901760, %v4125_v33  ;;  %v4620_v0 = vpack.c.bf16 %v3623_v36, %v3621_v35  ;;  %v4621_v35 = vpack.c.bf16 %v3671_v54, %v3668_v53  ;;  %v4626_v36 = vpack.c.bf16 %v3828_v52, %v3815_v25  ;;  %v4628_v53 = vld [vmem:[#allocation12_spill] sm:$0xff]  ;;  %v4629_v54 = vld [vmem:[#allocation10_spill] sm:$0xff] }
  0xc3   : > { %2326 = vmatprep.mubr.msk.f32.mxu1 %vm3347_vm0, %v4604_v56  ;;  %2575 = vmatprep.mubr.msk.f32.mxu0 %vm3347_vm0, %v4604_v56 }
  0xc4   : > { %v610_v46 = vsub.f32 %v4125_v33, %v609_v29 }
  0xc6   : > { %2327 = vmatmul.mubr.f32.gmra.mrb[26].mxu1 %v581_v57  ;;  %2576 = vmatmul.mubr.f32.gmra.mrb[26].mxu0 %v579_v34  ;;  %v611_v34 = vand.u32 4294901760, %v610_v46 }
  0xc7   : > { %2329 = vmatprep.mubr.msk.f32.mxu1 %vm3347_vm0, %v4604_v56  ;;  %2578 = vmatprep.mubr.msk.f32.mxu0 %vm3347_vm0, %v4604_v56 }
  0xca   : > { %2330 = vmatmul.mubr.f32.gmra.mrb[28].mxu1 %v591_v8  ;;  %2579 = vmatmul.mubr.f32.gmra.mrb[28].mxu0 %v589_v21 }
  0xcb   : > { %2332 = vmatprep.mubr.msk.f32.mxu1 %vm3347_vm0, %v4604_v56  ;;  %2581 = vmatprep.mubr.msk.f32.mxu0 %vm3347_vm0, %v4604_v56 }
  0xce   : > { %2333 = vmatmul.mubr.f32.gmra.mrb[30].mxu1 %v601_v47  ;;  %2582 = vmatmul.mubr.f32.gmra.mrb[30].mxu0 %v599_v55 }
  0xcf   : > { %2335 = vmatprep.mubr.msk.f32.mxu1 %vm3347_vm0, %v4604_v56  ;;  %2584 = vmatprep.mubr.msk.f32.mxu0 %vm3347_vm0, %v4604_v56 }
  0xd2   : > { %2336 = vmatmul.mubr.f32.gmra.mrb[32].mxu1 %v611_v34  ;;  %2585 = vmatmul.mubr.f32.gmra.mrb[32].mxu0 %v609_v29 }
  0xd3   : > { %2370 = vmatprep.mubr.msk.f32.mxu1 %vm3347_vm0, %v4604_v56  ;;  %2619 = vmatprep.mubr.msk.f32.mxu0 %vm3347_vm0, %v4604_v56 }
  0xd6   : > { %2371 = vmatmul.mubr.f32.vlgmr.msra.gmra.mrb[0].mxu1 %v3637_v40  ;;  %2620 = vmatmul.mubr.f32.vlgmr.msra.gmra.mrb[0].mxu0 %v3637_v40 }
  0xd7   : > { %2803 = vmatpush3.bf16.msra.mxu1 %v4620_v0  ;;  %2373 = vmatprep.mubr.msk.f32.mxu1 %vm3347_vm0, %v4604_v56 }
  0xd8   : > { %2622 = vmatprep.mubr.msk.f32.mxu0 %vm3347_vm0, %v4604_v56  ;;  %2875 = vmatpush3.bf16.msra.mxu0 %v3567_v12  ;;  %v4622_v12 = vpack.c.bf16 %v3704_v3, %v3679_v59  ;;  %v4630_v59 = vld [vmem:[#allocation11_spill] sm:$0xff]  ;;  %v4634_v3 = vld [vmem:[#allocation16_spill] sm:$0xff] }
  0xd9   : > { %2804 = vmatprep.subr.bf16.mxu1 %v4601_v32  ;;  %2876 = vmatprep.subr.bf16.mxu0 %v4601_v32 }
  0xda   : > { %2374 = vmatmul.mubr.f32.gmra.mrb[2].mxu1 %v3665_v51  ;;  %2623 = vmatmul.mubr.f32.gmra.mrb[2].mxu0 %v3665_v51 }
  0xdb   : > { %2376 = vmatprep.mubr.msk.f32.mxu1 %vm3347_vm0, %v4604_v56  ;;  %2625 = vmatprep.mubr.msk.f32.mxu0 %vm3347_vm0, %v4604_v56 }
  0xdc   : > { %2806 = vmatpush3.bf16.msra.mxu1 %v4621_v35  ;;  %2878 = vmatpush3.bf16.msra.mxu0 %v3571_v13  ;;  %v4623_v13 = vpack.c.bf16 %v3730_v16, %v3715_v6  ;;  %v4635_v6 = vld [vmem:[#allocation17_spill] sm:$0xff] }
  0xdd   : > { %2807 = vmatprep.subr.bf16.mxu1 %v4601_v32  ;;  %2879 = vmatprep.subr.bf16.mxu0 %v4601_v32 }
  0xde   : > { %2377 = vmatmul.mubr.f32.gmra.mrb[4].mxu1 %v3723_v15  ;;  %2626 = vmatmul.mubr.f32.gmra.mrb[4].mxu0 %v3723_v15 }
  0xdf   : > { %2379 = vmatprep.mubr.msk.f32.mxu1 %vm3347_vm0, %v4604_v56  ;;  %2628 = vmatprep.mubr.msk.f32.mxu0 %vm3347_vm0, %v4604_v56 }
  0xe0   : > { %2809 = vmatpush3.bf16.msra.mxu1 %v4622_v12  ;;  %2881 = vmatpush3.bf16.msra.mxu0 %v3595_v22  ;;  %v4624_v22 = vpack.c.bf16 %v3752_v24, %v3747_v17 }
  0xe1   : > { %2810 = vmatprep.subr.bf16.mxu1 %v4601_v32  ;;  %2882 = vmatprep.subr.bf16.mxu0 %v4601_v32 }
  0xe2   : > { %2380 = vmatmul.mubr.f32.gmra.mrb[6].mxu1 %v3757_v39  ;;  %2629 = vmatmul.mubr.f32.gmra.mrb[6].mxu0 %v3757_v39 }
  0xe3   : > { %2382 = vmatprep.mubr.msk.f32.mxu1 %vm3347_vm0, %v4604_v56  ;;  %2631 = vmatprep.mubr.msk.f32.mxu0 %vm3347_vm0, %v4604_v56 }
  0xe4   : > { %2812 = vmatpush3.bf16.msra.mxu1 %v4623_v13  ;;  %2884 = vmatpush3.bf16.msra.mxu0 %v3615_v30  ;;  %v4625_v30 = vpack.c.bf16 %v3791_v9, %v3786_v5 }
  0xe5   : > { %2813 = vmatprep.subr.bf16.mxu1 %v4601_v32  ;;  %2885 = vmatprep.subr.bf16.mxu0 %v4601_v32 }
  0xe6   : > { %2383 = vmatmul.mubr.f32.gmra.mrb[8].mxu1 %v3801_v28  ;;  %2632 = vmatmul.mubr.f32.gmra.mrb[8].mxu0 %v3801_v28 }
  0xe7   : > { %2385 = vmatprep.mubr.msk.f32.mxu1 %vm3347_vm0, %v4604_v56  ;;  %2634 = vmatprep.mubr.msk.f32.mxu0 %vm3347_vm0, %v4604_v56 }
  0xe8   : > { %2815 = vmatpush3.bf16.msra.mxu1 %v4624_v22  ;;  %2887 = vmatpush3.bf16.msra.mxu0 %v3647_v44  ;;  %v4627_v44 = vpack.c.bf16 %v3903_v37, %v3864_v23 }
  0xe9   : > { %2816 = vmatprep.subr.bf16.mxu1 %v4601_v32  ;;  %2888 = vmatprep.subr.bf16.mxu0 %v4601_v32 }
  0xea   : > { %2386 = vmatmul.mubr.f32.gmra.mrb[10].mxu1 %v3834_v4  ;;  %2635 = vmatmul.mubr.f32.gmra.mrb[10].mxu0 %v3834_v4 }
  0xeb   : > { %2388 = vmatprep.mubr.msk.f32.mxu1 %vm3347_vm0, %v4604_v56  ;;  %2637 = vmatprep.mubr.msk.f32.mxu0 %vm3347_vm0, %v4604_v56 }
  0xec   : > { %2818 = vmatpush3.bf16.msra.mxu1 %v4625_v30  ;;  %2890 = vmatpush3.bf16.msra.mxu0 %v3687_v60  ;;  %v4631_v60 = vld [vmem:[#allocation13_spill] sm:$0xff] }
  0xed   : > { %2819 = vmatprep.subr.bf16.mxu1 %v4601_v32  ;;  %2891 = vmatprep.subr.bf16.mxu0 %v4601_v32 }
  0xee   : > { %2389 = vmatmul.mubr.f32.gmra.mrb[12].mxu1 %v3841_v48  ;;  %2638 = vmatmul.mubr.f32.gmra.mrb[12].mxu0 %v3841_v48 }
  0xef   : > { %2391 = vmatprep.mubr.msk.f32.mxu1 %vm3347_vm0, %v4604_v56  ;;  %2640 = vmatprep.mubr.msk.f32.mxu0 %vm3347_vm0, %v4604_v56 }
  0xf0   : > { %2821 = vmatpush3.bf16.msra.mxu1 %v4626_v36  ;;  %2893 = vmatpush3.bf16.msra.mxu0 %v3738_v20 }
  0xf1   : > { %2822 = vmatprep.subr.bf16.mxu1 %v4601_v32  ;;  %2894 = vmatprep.subr.bf16.mxu0 %v4601_v32 }
  0xf2   : > { %2392 = vmatmul.mubr.f32.gmra.mrb[14].mxu1 %v3880_v43  ;;  %2641 = vmatmul.mubr.f32.gmra.mrb[14].mxu0 %v3880_v43 }
  0xf3   : > { %2394 = vmatprep.mubr.msk.f32.mxu1 %vm3347_vm0, %v4604_v56  ;;  %2643 = vmatprep.mubr.msk.f32.mxu0 %vm3347_vm0, %v4604_v56 }
  0xf4   : > { %2824 = vmatpush3.bf16.msra.mxu1 %v4627_v44  ;;  %2896 = vmatpush3.bf16.msra.mxu0 %v4628_v53 }
  0xf6   : > { %2395 = vmatmul.mubr.f32.gmra.mrb[16].mxu1 %v3948_v45  ;;  %2644 = vmatmul.mubr.f32.gmra.mrb[16].mxu0 %v3948_v45 }
  0xf7   : > { %2397 = vmatprep.mubr.msk.f32.mxu1 %vm3347_vm0, %v4604_v56  ;;  %2646 = vmatprep.mubr.msk.f32.mxu0 %vm3347_vm0, %v4604_v56 }
  0xfa   : > { %2398 = vmatmul.mubr.f32.gmra.mrb[18].mxu1 %v3981_v38  ;;  %2647 = vmatmul.mubr.f32.gmra.mrb[18].mxu0 %v3981_v38 }
  0xfb   : > { %2400 = vmatprep.mubr.msk.f32.mxu1 %vm3347_vm0, %v4604_v56  ;;  %2649 = vmatprep.mubr.msk.f32.mxu0 %vm3347_vm0, %v4604_v56 }
  0xfe   : > { %2401 = vmatmul.mubr.f32.gmra.mrb[20].mxu1 %v4003_v19  ;;  %2650 = vmatmul.mubr.f32.gmra.mrb[20].mxu0 %v4003_v19 }
  0xff   : > { %2403 = vmatprep.mubr.msk.f32.mxu1 %vm3347_vm0, %v4604_v56  ;;  %2652 = vmatprep.mubr.msk.f32.mxu0 %vm3347_vm0, %v4604_v56 }
 0x102   : > { %2404 = vmatmul.mubr.f32.gmra.mrb[22].mxu1 %v4038_v61  ;;  %2653 = vmatmul.mubr.f32.gmra.mrb[22].mxu0 %v4038_v61 }
 0x103   : > { %2406 = vmatprep.mubr.msk.f32.mxu1 %vm3347_vm0, %v4604_v56  ;;  %2655 = vmatprep.mubr.msk.f32.mxu0 %vm3347_vm0, %v4604_v56 }
 0x106   : > { %2407 = vmatmul.mubr.f32.gmra.mrb[24].mxu1 %v4061_v11  ;;  %2656 = vmatmul.mubr.f32.gmra.mrb[24].mxu0 %v4061_v11 }
 0x107   : > { %2409 = vmatprep.mubr.msk.f32.mxu1 %vm3347_vm0, %v4604_v56  ;;  %2658 = vmatprep.mubr.msk.f32.mxu0 %vm3347_vm0, %v4604_v56 }
 0x10a   : > { %2410 = vmatmul.mubr.f32.gmra.mrb[26].mxu1 %v4081_v62  ;;  %2659 = vmatmul.mubr.f32.gmra.mrb[26].mxu0 %v4081_v62 }
 0x10b   : > { %2412 = vmatprep.mubr.msk.f32.mxu1 %vm3347_vm0, %v4604_v56  ;;  %2661 = vmatprep.mubr.msk.f32.mxu0 %vm3347_vm0, %v4604_v56 }
 0x10e   : > { %2413 = vmatmul.mubr.f32.gmra.mrb[28].mxu1 %v4094_v26  ;;  %2662 = vmatmul.mubr.f32.gmra.mrb[28].mxu0 %v4094_v26 }
 0x10f   : > { %2415 = vmatprep.mubr.msk.f32.mxu1 %vm3347_vm0, %v4604_v56  ;;  %2664 = vmatprep.mubr.msk.f32.mxu0 %vm3347_vm0, %v4604_v56 }
 0x112   : > { %2416 = vmatmul.mubr.f32.gmra.mrb[30].mxu1 %v4105_v41  ;;  %2665 = vmatmul.mubr.f32.gmra.mrb[30].mxu0 %v4105_v41 }
 0x113   : > { %2418 = vmatprep.mubr.msk.f32.mxu1 %vm3347_vm0, %v4604_v56  ;;  %2667 = vmatprep.mubr.msk.f32.mxu0 %vm3347_vm0, %v4604_v56 }
 0x116   : > { %2419 = vmatmul.mubr.f32.gmra.mrb[32].mxu1 %v4116_v1  ;;  %2668 = vmatmul.mubr.f32.gmra.mrb[32].mxu0 %v4116_v1 }
 0x117   : > { %2453 = vmatprep.mubr.msk.f32.mxu1 %vm3347_vm0, %v4604_v56  ;;  %2702 = vmatprep.mubr.msk.f32.mxu0 %vm3347_vm0, %v4604_v56 }
 0x11a   : > { %2454 = vmatmul.mubr.f32.vlgmr.msra.gmra.mrb[0].mxu1 %v4629_v54  ;;  %2703 = vmatmul.mubr.f32.vlgmr.msra.gmra.mrb[0].mxu0 %v3637_v40  ;;  %v4632_v40 = vld [vmem:[#allocation14_spill] sm:$0xff] }
 0x11b   : > { %2456 = vmatprep.mubr.msk.f32.mxu1 %vm3347_vm0, %v4604_v56  ;;  %2705 = vmatprep.mubr.msk.f32.mxu0 %vm3347_vm0, %v4604_v56 }
 0x11e   : > { %2457 = vmatmul.mubr.f32.gmra.mrb[2].mxu1 %v4630_v59  ;;  %2706 = vmatmul.mubr.f32.gmra.mrb[2].mxu0 %v3665_v51  ;;  %v4633_v51 = vld [vmem:[#allocation15_spill] sm:$0xff] }
 0x11f   : > { %2459 = vmatprep.mubr.msk.f32.mxu1 %vm3347_vm0, %v4604_v56  ;;  %2708 = vmatprep.mubr.msk.f32.mxu0 %vm3347_vm0, %v4604_v56 }
 0x122   : > { %2460 = vmatmul.mubr.f32.gmra.mrb[4].mxu1 %v4631_v60  ;;  %2709 = vmatmul.mubr.f32.gmra.mrb[4].mxu0 %v3723_v15  ;;  %v4396_v15 = vstv %s364_s29 }
 0x123   : > { %2462 = vmatprep.mubr.msk.f32.mxu1 %vm3347_vm0, %v4604_v56  ;;  %2711 = vmatprep.mubr.msk.f32.mxu0 %vm3347_vm0, %v4604_v56 }
 0x126   : > { %2463 = vmatmul.mubr.f32.gmra.mrb[6].mxu1 %v4632_v40  ;;  %2712 = vmatmul.mubr.f32.gmra.mrb[6].mxu0 %v3757_v39 }
 0x127   : > { %2465 = vmatprep.mubr.msk.f32.mxu1 %vm3347_vm0, %v4604_v56  ;;  %2714 = vmatprep.mubr.msk.f32.mxu0 %vm3347_vm0, %v4604_v56 }
 0x12a   : > { %2466 = vmatmul.mubr.f32.gmra.mrb[8].mxu1 %v4633_v51  ;;  %2715 = vmatmul.mubr.f32.gmra.mrb[8].mxu0 %v3801_v28 }
 0x12b   : > { %2468 = vmatprep.mubr.msk.f32.mxu1 %vm3347_vm0, %v4604_v56  ;;  %2717 = vmatprep.mubr.msk.f32.mxu0 %vm3347_vm0, %v4604_v56 }
 0x12e   : > { %2469 = vmatmul.mubr.f32.gmra.mrb[10].mxu1 %v4634_v3  ;;  %2718 = vmatmul.mubr.f32.gmra.mrb[10].mxu0 %v3834_v4 }
 0x12f   : > { %2471 = vmatprep.mubr.msk.f32.mxu1 %vm3347_vm0, %v4604_v56  ;;  %2720 = vmatprep.mubr.msk.f32.mxu0 %vm3347_vm0, %v4604_v56 }
 0x132   : > { %2472 = vmatmul.mubr.f32.gmra.mrb[12].mxu1 %v3878_v10  ;;  %2721 = vmatmul.mubr.f32.gmra.mrb[12].mxu0 %v3841_v48 }
 0x133   : > { %2474 = vmatprep.mubr.msk.f32.mxu1 %vm3347_vm0, %v4604_v56  ;;  %2723 = vmatprep.mubr.msk.f32.mxu0 %vm3347_vm0, %v4604_v56 }
 0x136   : > { %2475 = vmatmul.mubr.f32.gmra.mrb[14].mxu1 %v3915_v2  ;;  %2724 = vmatmul.mubr.f32.gmra.mrb[14].mxu0 %v3880_v43 }
 0x137   : > { %2477 = vmatprep.mubr.msk.f32.mxu1 %vm3347_vm0, %v4604_v56  ;;  %2726 = vmatprep.mubr.msk.f32.mxu0 %vm3347_vm0, %v4604_v56 }
 0x13a   : > { %2478 = vmatmul.mubr.f32.gmra.mrb[16].mxu1 %v3979_v18  ;;  %2727 = vmatmul.mubr.f32.gmra.mrb[16].mxu0 %v3948_v45 }
 0x13b   : > { %2480 = vmatprep.mubr.msk.f32.mxu1 %vm3347_vm0, %v4604_v56  ;;  %2729 = vmatprep.mubr.msk.f32.mxu0 %vm3347_vm0, %v4604_v56 }
 0x13e   : > { %2481 = vmatmul.mubr.f32.gmra.mrb[18].mxu1 %v4013_v49  ;;  %2730 = vmatmul.mubr.f32.gmra.mrb[18].mxu0 %v3981_v38 }
 0x13f   : > { %2483 = vmatprep.mubr.msk.f32.mxu1 %vm3347_vm0, %v4604_v56  ;;  %2732 = vmatprep.mubr.msk.f32.mxu0 %vm3347_vm0, %v4604_v56 }
 0x142   : > { %2484 = vmatmul.mubr.f32.gmra.mrb[20].mxu1 %v4635_v6  ;;  %2733 = vmatmul.mubr.f32.gmra.mrb[20].mxu0 %v4003_v19 }
 0x143   : > { %2486 = vmatprep.mubr.msk.f32.mxu1 %vm3347_vm0, %v4604_v56  ;;  %2735 = vmatprep.mubr.msk.f32.mxu0 %vm3347_vm0, %v4604_v56 }
 0x146   : > { %2487 = vmatmul.mubr.f32.gmra.mrb[22].mxu1 %v4059_v50  ;;  %2736 = vmatmul.mubr.f32.gmra.mrb[22].mxu0 %v4038_v61 }
 0x147   : > { %2489 = vmatprep.mubr.msk.f32.mxu1 %vm3347_vm0, %v4604_v56  ;;  %2738 = vmatprep.mubr.msk.f32.mxu0 %vm3347_vm0, %v4604_v56 }
 0x14a   : > { %2490 = vmatmul.mubr.f32.gmra.mrb[24].mxu1 %v4077_v27  ;;  %2739 = vmatmul.mubr.f32.gmra.mrb[24].mxu0 %v4061_v11 }
 0x14b   : > { %2492 = vmatprep.mubr.msk.f32.mxu1 %vm3347_vm0, %v4604_v56  ;;  %2741 = vmatprep.mubr.msk.f32.mxu0 %vm3347_vm0, %v4604_v56 }
 0x14e   : > { %2493 = vmatmul.mubr.f32.gmra.mrb[26].mxu1 %v4092_v58  ;;  %2742 = vmatmul.mubr.f32.gmra.mrb[26].mxu0 %v4081_v62 }
 0x14f   : > { %2495 = vmatprep.mubr.msk.f32.mxu1 %vm3347_vm0, %v4604_v56  ;;  %2744 = vmatprep.mubr.msk.f32.mxu0 %vm3347_vm0, %v4604_v56 }
 0x152   : > { %2496 = vmatmul.mubr.f32.gmra.mrb[28].mxu1 %v4103_v31  ;;  %2745 = vmatmul.mubr.f32.gmra.mrb[28].mxu0 %v4094_v26 }
 0x153   : > { %2498 = vmatprep.mubr.msk.f32.mxu1 %vm3347_vm0, %v4604_v56  ;;  %2747 = vmatprep.mubr.msk.f32.mxu0 %vm3347_vm0, %v4604_v56 }
 0x156   : > { %2499 = vmatmul.mubr.f32.gmra.mrb[30].mxu1 %v4114_v7  ;;  %2748 = vmatmul.mubr.f32.gmra.mrb[30].mxu0 %v4105_v41 }
 0x157   : > { %2501 = vmatprep.mubr.msk.f32.mxu1 %vm3347_vm0, %v4604_v56  ;;  %2750 = vmatprep.mubr.msk.f32.mxu0 %vm3347_vm0, %v4604_v56 }
 0x15a   : > { %2502 = vmatmul.mubr.f32.gmra.mrb[32].mxu1 %v4125_v33  ;;  %2751 = vmatmul.mubr.f32.gmra.mrb[32].mxu0 %v4116_v1 }
 0x1ed   : > { %v964_v16 = vpop.f32.mrb[0].mxu1  ;;  %v1595_v20 = vpop.f32.mrb[0].mxu0 }
 0x1ee   : > { %v2897_v17 = vadd.f32 %v964_v16, %v4396_v15  ;;  %v2455_v24 = vpop.f32.mrb[1].mxu1  ;;  %v2704_v39 = vpop.f32.mrb[1].mxu0 }
 0x1f0   : > { %v2898_v32 = vadd.f32 %v2897_v17, %v1595_v20 }
 0x1f1   : > { %v971_v5 = vpop.f32.mrb[2].mxu1  ;;  %v1601_v9 = vpop.f32.mrb[2].mxu0 }
 0x1f2   : > { %1696 = vst.msk [vmem:[%s4400_s20] sm:$0xff] %vm1695_vm1, %v2898_v32  ;;  %v2899_v28 = vadd.f32 %v971_v5, %v4396_v15  ;;  %v2458_v25 = vpop.f32.mrb[3].mxu1  ;;  %v2707_v43 = vpop.f32.mrb[3].mxu0 }
 0x1f4   : > { %v2900_v52 = vadd.f32 %v2899_v28, %v1601_v9 }
 0x1f5   : > { %v978_v61 = vpop.f32.mrb[4].mxu1  ;;  %v1607_v4 = vpop.f32.mrb[4].mxu0 }
 0x1f6   : > { %1697 = vst.msk [vmem:[%s4400_s20 + $0x8] sm:$0xff] %vm1695_vm1, %v2900_v52  ;;  %v2901_v48 = vadd.f32 %v978_v61, %v4396_v15  ;;  %v2461_v23 = vpop.f32.mrb[5].mxu1  ;;  %v2710_v10 = vpop.f32.mrb[5].mxu0 }
 0x1f8   : > { %v2902_v37 = vadd.f32 %v2901_v48, %v1607_v4 }
 0x1f9   : > { %v985_v56 = vpop.f32.mrb[6].mxu1  ;;  %v1613_v2 = vpop.f32.mrb[6].mxu0 }
 0x1fa   : > { %1698 = vst.msk [vmem:[%s4400_s20 + $0x10] sm:$0xff] %vm1695_vm1, %v2902_v37  ;;  %v2903_v45 = vadd.f32 %v985_v56, %v4396_v15  ;;  %v2464_v18 = vpop.f32.mrb[7].mxu1  ;;  %v2713_v38 = vpop.f32.mrb[7].mxu0 }
 0x1fc   : > { %v2904_v49 = vadd.f32 %v2903_v45, %v1613_v2 }
 0x1fd   : > { %v992_v19 = vpop.f32.mrb[8].mxu1  ;;  %v1619_v50 = vpop.f32.mrb[8].mxu0 }
 0x1fe   : > { %1699 = vst.msk [vmem:[%s4400_s20 + $0x18] sm:$0xff] %vm1695_vm1, %v2904_v49  ;;  %v2905_v11 = vadd.f32 %v992_v19, %v4396_v15  ;;  %v2467_v27 = vpop.f32.mrb[9].mxu1  ;;  %v2716_v62 = vpop.f32.mrb[9].mxu0 }
 0x200   : > { %v2906_v58 = vadd.f32 %v2905_v11, %v1619_v50 }
 0x201   : > { %v999_v26 = vpop.f32.mrb[10].mxu1  ;;  %v1625_v31 = vpop.f32.mrb[10].mxu0 }
 0x202   : > { %1700 = vst.msk [vmem:[%s4400_s20 + $0x20] sm:$0xff] %vm1695_vm1, %v2906_v58  ;;  %v2907_v41 = vadd.f32 %v999_v26, %v4396_v15  ;;  %v2470_v42 = vpop.f32.mrb[11].mxu1  ;;  %v2719_v21 = vpop.f32.mrb[11].mxu0 }
 0x204   : > { %v2908_v7 = vadd.f32 %v2907_v41, %v1625_v31 }
 0x205   : > { %v1006_v1 = vpop.f32.mrb[12].mxu1  ;;  %v1631_v57 = vpop.f32.mrb[12].mxu0 }
 0x206   : > { %1701 = vst.msk [vmem:[%s4400_s20 + $0x28] sm:$0xff] %vm1695_vm1, %v2908_v7  ;;  %v2909_v63 = vadd.f32 %v1006_v1, %v4396_v15  ;;  %v2473_v55 = vpop.f32.mrb[13].mxu1  ;;  %v2722_v33 = vpop.f32.mrb[13].mxu0 }
 0x208   : > { %v2910_v8 = vadd.f32 %v2909_v63, %v1631_v57 }
 0x209   : > { %v1013_v14 = vpop.f32.mrb[14].mxu1  ;;  %v1637_v29 = vpop.f32.mrb[14].mxu0 }
 0x20a   : > { %1702 = vst.msk [vmem:[%s4400_s20 + $0x30] sm:$0xff] %vm1695_vm1, %v2910_v8  ;;  %v2911_v47 = vadd.f32 %v1013_v14, %v4396_v15  ;;  %v2476_v46 = vpop.f32.mrb[15].mxu1  ;;  %v2725_v34 = vpop.f32.mrb[15].mxu0 }
 0x20c   : > { %v2912_v0 = vadd.f32 %v2911_v47, %v1637_v29 }
 0x20d   : > { %v1020_v35 = vpop.f32.mrb[16].mxu1  ;;  %v1643_v12 = vpop.f32.mrb[16].mxu0 }
 0x20e   : > { %1703 = vst.msk [vmem:[%s4400_s20 + $0x38] sm:$0xff] %vm1695_vm1, %v2912_v0  ;;  %v2913_v13 = vadd.f32 %v1020_v35, %v4396_v15  ;;  %v2479_v22 = vpop.f32.mrb[17].mxu1  ;;  %v2728_v30 = vpop.f32.mrb[17].mxu0 }
 0x210   : > { %v2914_v36 = vadd.f32 %v2913_v13, %v1643_v12 }
 0x211   : > { %v1027_v44 = vpop.f32.mrb[18].mxu1  ;;  %v1649_v53 = vpop.f32.mrb[18].mxu0 }
 0x212   : > { %1704 = vst.msk [vmem:[%s4400_s20 + $0x40] sm:$0xff] %vm1695_vm1, %v2914_v36  ;;  %v2915_v54 = vadd.f32 %v1027_v44, %v4396_v15  ;;  %v2482_v59 = vpop.f32.mrb[19].mxu1  ;;  %v2731_v60 = vpop.f32.mrb[19].mxu0 }
 0x214   : > { %v2916_v40 = vadd.f32 %v2915_v54, %v1649_v53 }
 0x215   : > { %v1034_v51 = vpop.f32.mrb[20].mxu1  ;;  %v1655_v3 = vpop.f32.mrb[20].mxu0 }
 0x216   : > { %1705 = vst.msk [vmem:[%s4400_s20 + $0x48] sm:$0xff] %vm1695_vm1, %v2916_v40  ;;  %v2917_v6 = vadd.f32 %v1034_v51, %v4396_v15  ;;  %v2485_v16 = vpop.f32.mrb[21].mxu1  ;;  %v2734_v20 = vpop.f32.mrb[21].mxu0 }
 0x218   : > { %v2918_v17 = vadd.f32 %v2917_v6, %v1655_v3 }
 0x219   : > { %v1041_v24 = vpop.f32.mrb[22].mxu1  ;;  %v1661_v39 = vpop.f32.mrb[22].mxu0 }
 0x21a   : > { %1706 = vst.msk [vmem:[%s4400_s20 + $0x50] sm:$0xff] %vm1695_vm1, %v2918_v17  ;;  %v2919_v32 = vadd.f32 %v1041_v24, %v4396_v15  ;;  %v2488_v5 = vpop.f32.mrb[23].mxu1  ;;  %v2737_v9 = vpop.f32.mrb[23].mxu0 }
 0x21c   : > { %v2920_v28 = vadd.f32 %v2919_v32, %v1661_v39 }
 0x21d   : > { %v1048_v25 = vpop.f32.mrb[24].mxu1  ;;  %v1667_v43 = vpop.f32.mrb[24].mxu0 }
 0x21e   : > { %1707 = vst.msk [vmem:[%s4400_s20 + $0x58] sm:$0xff] %vm1695_vm1, %v2920_v28  ;;  %v2921_v52 = vadd.f32 %v1048_v25, %v4396_v15  ;;  %v2491_v61 = vpop.f32.mrb[25].mxu1  ;;  %v2740_v4 = vpop.f32.mrb[25].mxu0 }
 0x220   : > { %v2922_v48 = vadd.f32 %v2921_v52, %v1667_v43 }
 0x221   : > { %v1055_v23 = vpop.f32.mrb[26].mxu1  ;;  %v1673_v10 = vpop.f32.mrb[26].mxu0 }
 0x222   : > { %1708 = vst.msk [vmem:[%s4400_s20 + $0x60] sm:$0xff] %vm1695_vm1, %v2922_v48  ;;  %v2923_v37 = vadd.f32 %v1055_v23, %v4396_v15  ;;  %v2494_v56 = vpop.f32.mrb[27].mxu1  ;;  %v2743_v2 = vpop.f32.mrb[27].mxu0 }
 0x224   : > { %v2924_v45 = vadd.f32 %v2923_v37, %v1673_v10 }
 0x225   : > { %v1062_v18 = vpop.f32.mrb[28].mxu1  ;;  %v1679_v38 = vpop.f32.mrb[28].mxu0 }
 0x226   : > { %1709 = vst.msk [vmem:[%s4400_s20 + $0x68] sm:$0xff] %vm1695_vm1, %v2924_v45  ;;  %v2925_v49 = vadd.f32 %v1062_v18, %v4396_v15  ;;  %v2497_v19 = vpop.f32.mrb[29].mxu1  ;;  %v2746_v50 = vpop.f32.mrb[29].mxu0 }
 0x228   : > { %v2926_v11 = vadd.f32 %v2925_v49, %v1679_v38 }
 0x229   : > { %v1069_v27 = vpop.f32.mrb[30].mxu1  ;;  %v1685_v62 = vpop.f32.mrb[30].mxu0 }
 0x22a   : > { %1710 = vst.msk [vmem:[%s4400_s20 + $0x70] sm:$0xff] %vm1695_vm1, %v2926_v11  ;;  %v2927_v58 = vadd.f32 %v1069_v27, %v4396_v15  ;;  %v2500_v26 = vpop.f32.mrb[31].mxu1  ;;  %v2749_v31 = vpop.f32.mrb[31].mxu0 }
 0x22c   : > { %v2928_v41 = vadd.f32 %v2927_v58, %v1685_v62  ;;  %1719 = sbr.rel (!%p4636_p7) target bundleno = 624 (0x270), region = 48 }
 0x22d   : > { %v1076_v42 = vpop.f32.mrb[32].mxu1  ;;  %v1691_v21 = vpop.f32.mrb[32].mxu0 }
 0x22e   : > { %1711 = vst.msk [vmem:[%s4400_s20 + $0x78] sm:$0xff] %vm1695_vm1, %v2928_v41  ;;  %v2929_v7 = vadd.f32 %v1076_v42, %v4396_v15  ;;  %v2503_v1 = vpop.f32.mrb[33].mxu1  ;;  %v2752_v57 = vpop.f32.mrb[33].mxu0 }
 0x230   : > { %v2930_v63 = vadd.f32 %v2929_v7, %v1691_v21 }
 0x232   : > { %1712 = vst.msk [vmem:[%s4400_s20 + $0x80] sm:$0xff] %vm1695_vm1, %v2930_v63 }
 0x233   : > { %s4649_s25 = smov (!%p1722_p4, %s1721_s25), 17 }
 0x234   : > { %s2042_s8 = sshll.u32 %s4649_s25, 7 }
 0x235   : > { %p2045_p13 = scmp.eq.s32.totalorder %s2042_s8, 0 }
 0x236   : > { %3176 = sdivrem.u32 (!%p2045_p13), %s4649_s25, 17 }
 0x237   : > { %1730 = sbr.rel (%p2045_p13) target bundleno = 624 (0x270), region = 52 }
 0x23f   : > { %s4465_s27 = spop.drf %3176 }
 0x240   : > { %p2046_p1 = scmp.le.s32.totalorder %s4465_s27, 0 }
 0x241   : > { %s4637_s0 = smov (!%p2046_p1), %s4459_s23  ;;  %s4638_s28 = smov (!%p2046_p1), %s4400_s20 }
 0x242   : > { %1972 = sbr.rel (%p2046_p1) target bundleno = 595 (0x253), region = 143  ;;  %s4474_s26 = smov (!%p2046_p1), 0  }
 0x243   : > { %s4476_s30 = smov (!%p2046_p1), 0  }
 0x249 LB: >> { %v1826_v15 = vld [vmem:[%s3314_s28] sm:$0xff]  ;;  %v1828_v55 = vld [vmem:[%s3314_s28 + $0x8] sm:$0xff]  ;;  %v1830_v33 = vld [vmem:[%s3314_s28 + $0x10] sm:$0xff]  ;;  %s1860_s5 = sadd.s32 1, %s3318_s26  ;;  %s1820_s30 = sadd.s32 1, %s3322_s30   ;;  %s3322_s30 = sphi %s4476_s30, %s1820_s30   ;;  %s3318_s26 = sphi %s4474_s26, %s4639_s26   ;;  %s3314_s28 = sphi %s4638_s28, %s1865_s28   ;;  %s3310_s0 = sphi %s4637_s0, %s1866_s0  }
 0x24a   : >> { %1827 = vst [vmem:[%s3310_s0] sm:$0xff] %v1826_v15  ;;  %1829 = vst [vmem:[%s3310_s0 + $0x8] sm:$0xff] %v1828_v55  ;;  %v1832_v8 = vld [vmem:[%s3314_s28 + $0x18] sm:$0xff]  ;;  %v1834_v14 = vld [vmem:[%s3314_s28 + $0x20] sm:$0xff]  ;;  %p1861_p2 = scmp.ge.s32.totalorder %s1860_s5, %s4465_s27  ;;  %p1819_p3 = scmp.ge.s32.totalorder %s1820_s30, %s4465_s27 }
 0x24b   : >> { %1831 = vst [vmem:[%s3310_s0 + $0x10] sm:$0xff] %v1830_v33  ;;  %v1836_v29 = vld [vmem:[%s3314_s28 + $0x28] sm:$0xff]  ;;  %1833 = vst [vmem:[%s3310_s0 + $0x18] sm:$0xff] %v1832_v8  ;;  %v1838_v47 = vld [vmem:[%s3314_s28 + $0x30] sm:$0xff] }
 0x24c   : >> { %1835 = vst [vmem:[%s3310_s0 + $0x20] sm:$0xff] %v1834_v14  ;;  %1837 = vst [vmem:[%s3310_s0 + $0x28] sm:$0xff] %v1836_v29  ;;  %v1840_v46 = vld [vmem:[%s3314_s28 + $0x38] sm:$0xff]  ;;  %v1842_v34 = vld [vmem:[%s3314_s28 + $0x40] sm:$0xff]  ;;  %s4651_s5 = smov (%p1861_p2, %s1860_s5), 0  ;;  %1822 = sbr.rel (!%p1819_p3) target bundleno = 585 (0x249), region = 149 }
 0x24d   : >> { %1839 = vst [vmem:[%s3310_s0 + $0x30] sm:$0xff] %v1838_v47  ;;  %1841 = vst [vmem:[%s3310_s0 + $0x38] sm:$0xff] %v1840_v46  ;;  %v1844_v0 = vld [vmem:[%s3314_s28 + $0x48] sm:$0xff]  ;;  %v1846_v35 = vld [vmem:[%s3314_s28 + $0x50] sm:$0xff]  ;;  %s1863_s7 = smul.u32 136, %s4651_s5  ;;  %s4639_s26 = smov %s4651_s5 }
 0x24e   : >> { %1843 = vst [vmem:[%s3310_s0 + $0x40] sm:$0xff] %v1842_v34  ;;  %v1848_v12 = vld [vmem:[%s3314_s28 + $0x58] sm:$0xff]  ;;  %1845 = vst [vmem:[%s3310_s0 + $0x48] sm:$0xff] %v1844_v0  ;;  %v1850_v13 = vld [vmem:[%s3314_s28 + $0x60] sm:$0xff] }
 0x24f   : >> { %1847 = vst [vmem:[%s3310_s0 + $0x50] sm:$0xff] %v1846_v35  ;;  %1849 = vst [vmem:[%s3310_s0 + $0x58] sm:$0xff] %v1848_v12  ;;  %v1852_v22 = vld [vmem:[%s3314_s28 + $0x68] sm:$0xff]  ;;  %v1854_v30 = vld [vmem:[%s3314_s28 + $0x70] sm:$0xff] }
 0x250   : >> { %1851 = vst [vmem:[%s3310_s0 + $0x60] sm:$0xff] %v1850_v13  ;;  %1853 = vst [vmem:[%s3310_s0 + $0x68] sm:$0xff] %v1852_v22  ;;  %v1856_v36 = vld [vmem:[%s3314_s28 + $0x78] sm:$0xff]  ;;  %v1858_v44 = vld [vmem:[%s3314_s28 + $0x80] sm:$0xff]  ;;  %s1865_s28 = scalar_lea.vmem %s4400_s20, %s1863_s7 [#allocation7]  }
 0x251   : >> { %1855 = vst [vmem:[%s3310_s0 + $0x70] sm:$0xff] %v1854_v30  ;;  %1857 = vst [vmem:[%s3310_s0 + $0x78] sm:$0xff] %v1856_v36 }
 0x252   : >> { %1859 = vst [vmem:[%s3310_s0 + $0x80] sm:$0xff] %v1858_v44  ;;  %s1866_s0 = scalar_lea.vmem %s4459_s23, %s1863_s7  }
 0x253 PF: > { %3178 = sdivrem.u32 %s4649_s25, 17 }
 0x254   : > { %s2047_s9 = smul.u32 136, %s4465_s27 }
 0x256   : > { %s1871_s10 = scalar_lea.vmem %s4400_s20, %s2047_s9 [#allocation7]   ;;  %s1873_s12 = scalar_lea.vmem %s4459_s23, %s2047_s9  }
 0x25c   : > { %s3179_s13 = spop.drf %3178 }
 0x25d   : > { %p2049_p8 = scmp.le.s32.totalorder %s3179_s13, 0 }
 0x25e   : > { %s3324_s15 = smov (!%p2049_p8), %s1873_s12   ;;  %s3328_s16 = smov (!%p2049_p8), %s1871_s10  }
 0x25f   : > { %1986 = sbr.rel (%p2049_p8) target bundleno = 624 (0x270), region = 154  ;;  %s3332_s22 = smov (!%p2049_p8), 0  }
 0x260   : > { %s3336_s29 = smov (!%p2049_p8), 0  }
 0x266 LB: >> { %v1883_v53 = vld [vmem:[%s3330_s16] sm:$0xff]  ;;  %s1885_s11 = sadd.s32 1, %s3334_s22  ;;  %s1877_s29 = sadd.s32 1, %s3338_s29   ;;  %s3338_s29 = sphi %s3336_s29, %s1877_s29   ;;  %s3334_s22 = sphi %s3332_s22, %s3333_s22   ;;  %s3330_s16 = sphi %s3328_s16, %s1890_s16   ;;  %s3326_s15 = sphi %s3324_s15, %s1891_s15  }
 0x267   : >> { %1884 = vst [vmem:[%s3326_s15] sm:$0xff] %v1883_v53  ;;  %p1886_p11 = scmp.ge.s32.totalorder %s1885_s11, %s3179_s13  ;;  %p1876_p0 = scmp.ge.s32.totalorder %s1877_s29, %s3179_s13 }
 0x269   : >> { %s4653_s11 = smov (%p1886_p11, %s1885_s11), 0  ;;  %1879 = sbr.rel (!%p1876_p0) target bundleno = 614 (0x266), region = 160 }
 0x26a   : >> { %s2050_s20 = sshll.u32 %s4653_s11, 3  ;;  %s3333_s22 = smov %s4653_s11  }
 0x26b   : >> { %s1890_s16 = scalar_lea.vmem %s1871_s10, %s2050_s20 [#allocation7]   ;;  %s1891_s15 = scalar_lea.vmem %s1873_s12, %s2050_s20  }
 0x270 PF: > { %p18_p6 = scmp.ge.s32.totalorder %s3399_s21, 4   ;;  %s4640_s17 = smov %s3298_s18 }
 0x271   : > { %s4641_s18 = smov %s3302_s19  ;;  %s4642_s19 = smov %s3409_s24 }
 0x272   : > { %s4643_s20 = smov %s3399_s21  ;;  %20 = sbr.rel (!%p18_p6) target bundleno = 7 (0x7), region = 171 }
 0x279   :  { %1907 = vsyncpa [#allocation4], 1 }
 0x27a   :  { %1909 = vsyncpa [#allocation4 + $0x1], 1 }
 0x27b   :  { %1910 = vsyncpa [#allocation6], 1 }
 0x27c   :  { %1912 = vsyncpa [#allocation6 + $0x1], 1 }

</bundles_post_ra>
